<compile_context>
chip_gen: v5e
topology: v5e:2x2
jax: 0.10.0
libtpu: 0.0.40
codegen_flags: <defaults>
</compile_context>

<pallas_src>
import functools

import jax
import jax.numpy as jnp
from jax import lax
from jax.experimental import pallas as pl
from jax.experimental.pallas import tpu as pltpu


def _round_up(x, m):
    return ((x + m - 1) // m) * m


# ----------------------------------------------------------------------------
# Tiled fused matmul + bias + (optional) LeakyReLU kernel — the conv hot path.
# ----------------------------------------------------------------------------
def _matmul_bias_act_kernel(a_ref, w_ref, b_ref, o_ref, acc_ref, *,
                            negative_slope):
    @pl.when(pl.program_id(2) == 0)
    def _init():
        acc_ref[...] = jnp.zeros_like(acc_ref)

    # bf16 operands, f32 accumulation on the MXU.
    acc_ref[...] += jnp.dot(a_ref[...], w_ref[...],
                            preferred_element_type=jnp.float32)

    @pl.when(pl.program_id(2) == pl.num_programs(2) - 1)
    def _finalize():
        acc = acc_ref[...] + b_ref[...]          # (1, tn) broadcast over rows
        if negative_slope is not None:
            acc = jnp.where(acc >= 0, acc, negative_slope * acc)
        o_ref[...] = acc.astype(o_ref.dtype)


def matmul_bias_act(a, w, b, negative_slope=None, out_dtype=jnp.float32,
                    tm_max=1024, tn_max=256, tk_max=2048):
    """a: (M, K), w: (K, N), b: (1, N) -> (M, N) out_dtype.

    Operands cast to bf16 (f32 accumulation in a VMEM scratch).  K and N use
    full-dim blocks (no padding) when they fit a single tile; M padding is
    bounded by a near-2x guard.
    """
    M, K = a.shape
    K2, N = w.shape
    assert K == K2

    # M tile: multiple of 8, with a guard against near-2x padding.
    tm = min(tm_max, _round_up(M, 8))
    while tm > 8 and _round_up(M, tm) - M > max(M // 8, 8):
        tm = _round_up(tm // 2, 8)
    Mp = _round_up(M, tm)

    # K / N: single full-dim block when it fits (no padding, single K pass);
    # otherwise fall back to 128-aligned tiles with zero padding.
    if K <= tk_max:
        tk, Kp = K, K
    else:
        tk, Kp = tk_max, _round_up(K, tk_max)
    if N <= tn_max:
        tn, Np = N, N
    else:
        tn, Np = tn_max, _round_up(N, tn_max)

    a_p = a.astype(jnp.bfloat16)
    if (Mp, Kp) != (M, K):
        a_p = jnp.pad(a_p, ((0, Mp - M), (0, Kp - K)))
    w_p = w.astype(jnp.bfloat16)
    if (Kp, Np) != (K, N):
        w_p = jnp.pad(w_p, ((0, Kp - K), (0, Np - N)))
    b_p = b.astype(jnp.float32).reshape(1, N)
    if Np != N:
        b_p = jnp.pad(b_p, ((0, 0), (0, Np - N)))

    grid = (Mp // tm, Np // tn, Kp // tk)
    kern = functools.partial(_matmul_bias_act_kernel,
                             negative_slope=negative_slope)
    out = pl.pallas_call(
        kern,
        out_shape=jax.ShapeDtypeStruct((Mp, Np), out_dtype),
        grid=grid,
        in_specs=[
            pl.BlockSpec((tm, tk), lambda i, j, k: (i, k)),
            pl.BlockSpec((tk, tn), lambda i, j, k: (k, j)),
            pl.BlockSpec((1, tn), lambda i, j, k: (0, j)),
        ],
        out_specs=pl.BlockSpec((tm, tn), lambda i, j, k: (i, j)),
        scratch_shapes=[pltpu.VMEM((tm, tn), jnp.float32)],
        compiler_params=pltpu.CompilerParams(
            dimension_semantics=("parallel", "parallel", "arbitrary"),
            vmem_limit_bytes=32 * 1024 * 1024),
    )(a_p, w_p, b_p)
    if (Mp, Np) != (M, N):
        out = out[:M, :N]
    return out


# ----------------------------------------------------------------------------
# Single-output-channel conv matmul: out (1, M) = w_row (1, K) . cols (M, K).
# Lane-dense (1, tm) output — no OC padding to 128.
# ----------------------------------------------------------------------------
def _conv_oc1_kernel(a_ref, w_ref, b_ref, o_ref):
    dn = (((1,), (1,)), ((), ()))   # contract K (last dim of both operands)
    out = lax.dot_general(w_ref[...], a_ref[...], dn,
                          preferred_element_type=jnp.float32)   # (1, tm)
    o_ref[...] = out + b_ref[0, 0]


def conv_oc1_matvec(cols, w_row, bias_scalar, tm_max=512):
    """cols: (M, K), w_row: (1, K), bias scalar -> (M,) float32."""
    M, K = cols.shape
    tm = min(tm_max, _round_up(M, 128))      # lanes of the (1, M) output
    Mp = _round_up(M, tm)

    a = cols.astype(jnp.bfloat16)
    if Mp != M:
        a = jnp.pad(a, ((0, Mp - M), (0, 0)))
    w = w_row.astype(jnp.bfloat16)
    b = jnp.asarray(bias_scalar, jnp.float32).reshape(1, 1)

    out = pl.pallas_call(
        _conv_oc1_kernel,
        out_shape=jax.ShapeDtypeStruct((1, Mp), jnp.float32),
        grid=(Mp // tm,),
        in_specs=[
            pl.BlockSpec((tm, K), lambda i: (i, 0)),
            pl.BlockSpec((1, K), lambda i: (0, 0)),
            pl.BlockSpec(memory_space=pltpu.MemorySpace.SMEM),   # scalar bias
        ],
        out_specs=pl.BlockSpec((1, tm), lambda i: (0, i)),
        compiler_params=pltpu.CompilerParams(
            dimension_semantics=("parallel",),
            vmem_limit_bytes=32 * 1024 * 1024),
    )(a, w, b)
    return out[0, :M]


# ----------------------------------------------------------------------------
# Conv2d via NHWC im2col (bf16 glue) + Pallas matmul kernels.
# ----------------------------------------------------------------------------
def _im2col_nhwc(x, k, stride, padding):
    # x: (N, H, W, C) -> cols: (N*OH*OW, k*k*C), patch ordering (kh, kw, c).
    N, H, W, C = x.shape
    xp = jnp.pad(x, ((0, 0), (padding, padding), (padding, padding), (0, 0)))
    OH = (H + 2 * padding - k) // stride + 1
    OW = (W + 2 * padding - k) // stride + 1
    patches = []
    for i in range(k):
        for j in range(k):
            patches.append(
                xp[:, i:i + stride * OH:stride, j:j + stride * OW:stride, :])
    cols = jnp.stack(patches, axis=3)            # (N, OH, OW, k*k, C)
    cols = cols.reshape(N * OH * OW, k * k * C)
    return cols, OH, OW


def conv2d_nhwc(x, weight, bias, stride, padding, negative_slope=None,
                out_dtype=jnp.bfloat16):
    """PyTorch-semantics Conv2d on an NHWC activation (weight: (OC,IC,KH,KW))."""
    N, H, W, C = x.shape
    OC, IC, KH, KW = weight.shape
    assert KH == KW and IC == C
    cols, OH, OW = _im2col_nhwc(x, KH, stride, padding)      # bf16 cols
    w2 = weight.transpose(2, 3, 1, 0).reshape(KH * KW * IC, OC)
    b2 = bias.reshape(1, OC)
    out = matmul_bias_act(cols, w2, b2, negative_slope, out_dtype=out_dtype)
    return out.reshape(N, OH, OW, OC)


def conv2d_oc1_nhwc(x, weight, bias, stride, padding):
    """Conv2d with a single output channel (the final PatchGAN layer)."""
    N, H, W, C = x.shape
    OC, IC, KH, KW = weight.shape
    assert OC == 1 and IC == C
    cols, OH, OW = _im2col_nhwc(x, KH, stride, padding)
    w_row = weight.transpose(2, 3, 1, 0).reshape(KH * KW * IC, 1).T   # (1, K)
    out = conv_oc1_matvec(cols, w_row, bias[0])                       # (M,)
    return out.reshape(N, OH, OW, 1)


# ----------------------------------------------------------------------------
# SelfAttention: fused qkv projection (matmul kernel) + flash-style attention
# kernel with online softmax over key tiles.  Residual + gamma fused in.
# ----------------------------------------------------------------------------
def _flash_attn_kernel(gamma_ref, q_ref, k_ref, v_ref, x_ref, o_ref,
                       m_sc, l_sc, acc_sc):
    kv = pl.program_id(2)

    @pl.when(kv == 0)
    def _init():
        m_sc[...] = jnp.full_like(m_sc, -jnp.inf)
        l_sc[...] = jnp.zeros_like(l_sc)
        acc_sc[...] = jnp.zeros_like(acc_sc)

    q = q_ref[...].astype(jnp.bfloat16)              # (tq, dqk)
    k = k_ref[...].astype(jnp.bfloat16)              # (tkv, dqk)
    v = v_ref[...].astype(jnp.bfloat16)              # (tkv, C)

    dn = (((1,), (1,)), ((), ()))                    # q . k^T, contract dqk
    s = lax.dot_general(q, k, dn, preferred_element_type=jnp.float32)  # (tq,tkv)

    m_prev = m_sc[...]
    m_new = jnp.maximum(m_prev, jnp.max(s, axis=-1, keepdims=True))
    alpha = jnp.exp(m_prev - m_new)                  # 0 on first step (-inf)
    p = jnp.exp(s - m_new)
    l_sc[...] = alpha * l_sc[...] + jnp.sum(p, axis=-1, keepdims=True)
    acc_sc[...] = alpha * acc_sc[...] + jnp.dot(
        p.astype(jnp.bfloat16), v, preferred_element_type=jnp.float32)
    m_sc[...] = m_new

    @pl.when(kv == pl.num_programs(2) - 1)
    def _finalize():
        gamma = gamma_ref[0, 0]
        attn = acc_sc[...] * pl.reciprocal(l_sc[...], approx=True)
        o_ref[...] = (gamma * attn
                      + x_ref[...].astype(jnp.float32)).astype(o_ref.dtype)


def _attn_tile(hw, pref=512):
    for t in (pref, 256, 128, 64, 32, 16, 8):
        if hw >= t and hw % t == 0:
            return t
    return hw


def self_attention(h_nhwc, params):
    """SAGAN-style self-attention on an NHWC activation (C channels)."""
    N, H, W, C = h_nhwc.shape
    HW = H * W
    C8 = C // 8
    x_flat = h_nhwc.reshape(N * HW, C)

    # Fused q/k/v projection: one (C, 2*C8 + C) matmul instead of 3 thin ones.
    w_qkv = jnp.concatenate([params["q_w"], params["k_w"], params["v_w"]],
                            axis=1)                                   # (C, 160)
    b_qkv = jnp.concatenate([params["q_b"], params["k_b"], params["v_b"]],
                            axis=1)                                   # (1, 160)
    qkv = matmul_bias_act(x_flat, w_qkv, b_qkv, negative_slope=None,
                          out_dtype=jnp.float32)                      # (N*HW, 160)

    q = qkv[:, :C8].reshape(N, HW, C8)
    k = qkv[:, C8:2 * C8].reshape(N, HW, C8)
    v = qkv[:, 2 * C8:].reshape(N, HW, C)
    x_res = h_nhwc.reshape(N, HW, C)

    tq = _attn_tile(HW)
    tkv = _attn_tile(HW)
    grid = (N, HW // tq, HW // tkv)

    out = pl.pallas_call(
        _flash_attn_kernel,
        out_shape=jax.ShapeDtypeStruct((N, HW, C), h_nhwc.dtype),
        grid=grid,
        in_specs=[
            pl.BlockSpec(memory_space=pltpu.MemorySpace.SMEM),        # gamma
            pl.BlockSpec((None, tq, C8), lambda b, qi, ki: (b, qi, 0)),
            pl.BlockSpec((None, tkv, C8), lambda b, qi, ki: (b, ki, 0)),
            pl.BlockSpec((None, tkv, C), lambda b, qi, ki: (b, ki, 0)),
            pl.BlockSpec((None, tq, C), lambda b, qi, ki: (b, qi, 0)),
        ],
        out_specs=pl.BlockSpec((None, tq, C), lambda b, qi, ki: (b, qi, 0)),
        scratch_shapes=[pltpu.VMEM((tq, 1), jnp.float32),
                        pltpu.VMEM((tq, 1), jnp.float32),
                        pltpu.VMEM((tq, C), jnp.float32)],
        compiler_params=pltpu.CompilerParams(
            dimension_semantics=("parallel", "parallel", "arbitrary"),
            vmem_limit_bytes=32 * 1024 * 1024),
    )(params["gamma"], q, k, v, x_res)
    return out.reshape(N, H, W, C)


# ----------------------------------------------------------------------------
# Parameter init (deterministic, shapes from the PyTorch __init__).
# ----------------------------------------------------------------------------
def init_params(key):
    ks = jax.random.split(key, 12)

    def conv_w(k, oc, ic, kk):
        fan_in = ic * kk * kk
        return (jax.random.normal(k, (oc, ic, kk, kk), jnp.float32)
                * (1.0 / jnp.sqrt(fan_in)))

    def conv_b(k, oc):
        return jax.random.normal(k, (oc,), jnp.float32) * 0.01

    def lin_w(k, ic, oc):   # 1x1 conv stored as (in, out) for x @ W
        return jax.random.normal(k, (ic, oc), jnp.float32) * (1.0 / jnp.sqrt(ic))

    p = {}
    p["c1_w"] = conv_w(ks[0], 64, 3, 4);   p["c1_b"] = conv_b(ks[1], 64)
    p["c2_w"] = conv_w(ks[2], 128, 64, 4); p["c2_b"] = conv_b(ks[3], 128)
    # SelfAttention(128): 1x1 convs -> channel matmuls, weights stored (C, OC).
    p["q_w"] = lin_w(ks[4], 128, 16);  p["q_b"] = conv_b(ks[5], 16).reshape(1, 16)
    p["k_w"] = lin_w(ks[6], 128, 16);  p["k_b"] = conv_b(ks[7], 16).reshape(1, 16)
    p["v_w"] = lin_w(ks[8], 128, 128); p["v_b"] = conv_b(ks[9], 128).reshape(1, 128)
    # nn.Parameter(torch.zeros(1)) in the reference -> zero init.
    p["gamma"] = jnp.zeros((1, 1), jnp.float32)
    p["c3_w"] = conv_w(ks[10], 1, 128, 4); p["c3_b"] = conv_b(ks[11], 1)
    return p


def discriminator_forward(params, x_nchw):
    # One layout/dtype conversion at the model boundary: NCHW f32 -> NHWC bf16.
    x = x_nchw.transpose(0, 2, 3, 1).astype(jnp.bfloat16)
    # Conv2d(3, 64, 4, stride=2, pad=1) + LeakyReLU(0.2)
    h = conv2d_nhwc(x, params["c1_w"], params["c1_b"], stride=2, padding=1,
                    negative_slope=0.2, out_dtype=jnp.bfloat16)
    # Conv2d(64, 128, 4, stride=2, pad=1) + LeakyReLU(0.2)
    h = conv2d_nhwc(h, params["c2_w"], params["c2_b"], stride=2, padding=1,
                    negative_slope=0.2, out_dtype=jnp.bfloat16)
    # SelfAttention(128)
    h = self_attention(h, params)
    # Conv2d(128, 1, 4, stride=1, pad=1) — dedicated single-OC kernel.
    out = conv2d_oc1_nhwc(h, params["c3_w"], params["c3_b"], stride=1, padding=1)
    # Back to NCHW at the boundary, f32 logits.
    return out.transpose(0, 3, 1, 2).astype(jnp.float32)


if __name__ == "__main__":
    key = jax.random.PRNGKey(0)
    pkey, xkey = jax.random.split(key)
    params = init_params(pkey)
    # Reference initialises gamma to 0 (attention output would be zeroed);
    # use a nonzero value for the smoke test so the attention kernel is
    # numerically exercised.
    params["gamma"] = jnp.full((1, 1), 0.25, jnp.float32)
    # NCHW input, small: batch=2, channels=3, spatial=16x16
    x = jax.random.normal(xkey, (2, 3, 16, 16), jnp.float32)
    fwd = jax.jit(discriminator_forward)
    out = jax.block_until_ready(fwd(params, x))
    assert out.shape == (2, 1, 3, 3), out.shape
    assert bool(jnp.all(jnp.isfinite(out)))
    print("KERNEL_OK")
</pallas_src>

<mosaic_0001>
module attributes {stable_mosaic.version = 11 : i64} {
  func.func @_matmul_bias_act_kernel(%arg0: i32, %arg1: i32, %arg2: i32, %arg3: memref<128x48xbf16, #tpu.memory_space<vmem>>, %arg4: memref<48x64xbf16, #tpu.memory_space<vmem>>, %arg5: memref<1x64xf32, #tpu.memory_space<vmem>>, %arg6: memref<128x64xbf16, #tpu.memory_space<vmem>>, %arg7: memref<128x64xf32, #tpu.memory_space<vmem>>) attributes {dimension_semantics = [#tpu.dimension_semantics<parallel>, #tpu.dimension_semantics<parallel>, #tpu.dimension_semantics<arbitrary>], iteration_bounds = array<i64: 1, 1, 1>, scalar_prefetch = 0 : i64, scratch_operands = 1 : i64, tpu.core_type = #tpu.core_type<tc>, window_params = [{transform_indices = @transform_0, window_bounds = array<i64: 128, 48>}, {transform_indices = @transform_1, window_bounds = array<i64: 48, 64>}, {transform_indices = @transform_2, window_bounds = array<i64: 1, 64>}, {transform_indices = @transform_3, window_bounds = array<i64: 128, 64>}]} {
    %c0_i32 = arith.constant 0 : i32
    %0 = arith.cmpi eq, %arg2, %c0_i32 : i32
    %1 = arith.extui %0 : i1 to i32
    %c0_i32_0 = arith.constant 0 : i32
    %2 = arith.cmpi ne, %1, %c0_i32_0 : i32
    scf.if %2 {
      %cst_10 = arith.constant 0.000000e+00 : f32
      %12 = vector.broadcast %cst_10 : f32 to vector<128x64xf32>
      %c0_11 = arith.constant 0 : index
      %c0_12 = arith.constant 0 : index
      %13 = vector.load %arg7[%c0_11, %c0_12] : memref<128x64xf32, #tpu.memory_space<vmem>>, vector<128x64xf32>
      tpu.vector_store %arg7[%c0_11, %c0_12], %12 {strides = array<i32>} : memref<128x64xf32, #tpu.memory_space<vmem>>, vector<128x64xf32>,
    } else {
    }
    %c0 = arith.constant 0 : index
    %c0_1 = arith.constant 0 : index
    %3 = vector.load %arg7[%c0, %c0_1] : memref<128x64xf32, #tpu.memory_space<vmem>>, vector<128x64xf32>
    %c0_2 = arith.constant 0 : index
    %c0_3 = arith.constant 0 : index
    %4 = vector.load %arg3[%c0_2, %c0_3] : memref<128x48xbf16, #tpu.memory_space<vmem>>, vector<128x48xbf16>
    %c0_4 = arith.constant 0 : index
    %c0_5 = arith.constant 0 : index
    %5 = vector.load %arg4[%c0_4, %c0_5] : memref<48x64xbf16, #tpu.memory_space<vmem>>, vector<48x64xbf16>
    %cst = arith.constant dense<0.000000e+00> : vector<128x64xf32>
    %6 = tpu.matmul %4, %5, %cst {dimension_numbers = #tpu.dot_dimension_numbers<[1], [0], [0], [1], [0, 0, 1, 1], [], []>} : vector<128x48xbf16>, vector<48x64xbf16>, vector<128x64xf32> -> vector<128x64xf32>
    %7 = arith.addf %3, %6 : vector<128x64xf32>
    %c0_6 = arith.constant 0 : index
    %c0_7 = arith.constant 0 : index
    %8 = vector.load %arg7[%c0_6, %c0_7] : memref<128x64xf32, #tpu.memory_space<vmem>>, vector<128x64xf32>
    tpu.vector_store %arg7[%c0_6, %c0_7], %7 {strides = array<i32>} : memref<128x64xf32, #tpu.memory_space<vmem>>, vector<128x64xf32>,
    %c0_i32_8 = arith.constant 0 : i32
    %9 = arith.cmpi eq, %arg2, %c0_i32_8 : i32
    %10 = arith.extui %9 : i1 to i32
    %c0_i32_9 = arith.constant 0 : i32
    %11 = arith.cmpi ne, %10, %c0_i32_9 : i32
    scf.if %11 {
      %c0_10 = arith.constant 0 : index
      %c0_11 = arith.constant 0 : index
      %12 = vector.load %arg7[%c0_10, %c0_11] : memref<128x64xf32, #tpu.memory_space<vmem>>, vector<128x64xf32>
      %c0_12 = arith.constant 0 : index
      %c0_13 = arith.constant 0 : index
      %13 = vector.load %arg5[%c0_12, %c0_13] : memref<1x64xf32, #tpu.memory_space<vmem>>, vector<1x64xf32>
      %14 = vector.broadcast %13 : vector<1x64xf32> to vector<128x64xf32>
      %15 = arith.addf %12, %14 : vector<128x64xf32>
      %cst_14 = arith.constant 0.000000e+00 : f32
      %16 = vector.broadcast %cst_14 : f32 to vector<128x64xf32>
      %17 = arith.cmpf oge, %15, %16 : vector<128x64xf32>
      %cst_15 = arith.constant 2.000000e-01 : f32
      %18 = vector.broadcast %cst_15 : f32 to vector<128x64xf32>
      %19 = arith.mulf %18, %15 : vector<128x64xf32>
      %20 = arith.select %17, %15, %19 : vector<128x64xi1>, vector<128x64xf32>
      %21 = arith.truncf %20 : vector<128x64xf32> to vector<128x64xbf16>
      %c0_16 = arith.constant 0 : index
      %c0_17 = arith.constant 0 : index
      %22 = vector.load %arg6[%c0_16, %c0_17] : memref<128x64xbf16, #tpu.memory_space<vmem>>, vector<128x64xbf16>
      tpu.vector_store %arg6[%c0_16, %c0_17], %21 {strides = array<i32>} : memref<128x64xbf16, #tpu.memory_space<vmem>>, vector<128x64xbf16>,
    } else {
    }
    return
  }
  func.func @transform_0(%arg0: i32, %arg1: i32, %arg2: i32) -> (i32, i32) {
    %c0_i32 = arith.constant 0 : i32
    return %arg0, %arg2 : i32, i32
  }
  func.func @transform_1(%arg0: i32, %arg1: i32, %arg2: i32) -> (i32, i32) {
    %c0_i32 = arith.constant 0 : i32
    return %arg2, %arg1 : i32, i32
  }
  func.func @transform_2(%arg0: i32, %arg1: i32, %arg2: i32) -> (i32, i32) {
    %c0_i32 = arith.constant 0 : i32
    %c0_i32_0 = arith.constant 0 : i32
    return %c0_i32, %arg1 : i32, i32
  }
  func.func @transform_3(%arg0: i32, %arg1: i32, %arg2: i32) -> (i32, i32) {
    %c0_i32 = arith.constant 0 : i32
    return %arg0, %arg1 : i32, i32
  }
}

module attributes {stable_mosaic.version = 11 : i64} {
  func.func @_matmul_bias_act_kernel(%arg0: i32, %arg1: i32, %arg2: i32, %arg3: memref<32x1024xbf16, #tpu.memory_space<vmem>>, %arg4: memref<1024x128xbf16, #tpu.memory_space<vmem>>, %arg5: memref<1x128xf32, #tpu.memory_space<vmem>>, %arg6: memref<32x128xbf16, #tpu.memory_space<vmem>>, %arg7: memref<32x128xf32, #tpu.memory_space<vmem>>) attributes {dimension_semantics = [#tpu.dimension_semantics<parallel>, #tpu.dimension_semantics<parallel>, #tpu.dimension_semantics<arbitrary>], iteration_bounds = array<i64: 1, 1, 1>, scalar_prefetch = 0 : i64, scratch_operands = 1 : i64, tpu.core_type = #tpu.core_type<tc>, window_params = [{transform_indices = @transform_0, window_bounds = array<i64: 32, 1024>}, {transform_indices = @transform_1, window_bounds = array<i64: 1024, 128>}, {transform_indices = @transform_2, window_bounds = array<i64: 1, 128>}, {transform_indices = @transform_3, window_bounds = array<i64: 32, 128>}]} {
    %c0_i32 = arith.constant 0 : i32
    %0 = arith.cmpi eq, %arg2, %c0_i32 : i32
    %1 = arith.extui %0 : i1 to i32
    %c0_i32_0 = arith.constant 0 : i32
    %2 = arith.cmpi ne, %1, %c0_i32_0 : i32
    scf.if %2 {
      %cst_10 = arith.constant 0.000000e+00 : f32
      %12 = vector.broadcast %cst_10 : f32 to vector<32x128xf32>
      %c0_11 = arith.constant 0 : index
      %c0_12 = arith.constant 0 : index
      %13 = vector.load %arg7[%c0_11, %c0_12] : memref<32x128xf32, #tpu.memory_space<vmem>>, vector<32x128xf32>
      tpu.vector_store %arg7[%c0_11, %c0_12], %12 {strides = array<i32>} : memref<32x128xf32, #tpu.memory_space<vmem>>, vector<32x128xf32>,
    } else {
    }
    %c0 = arith.constant 0 : index
    %c0_1 = arith.constant 0 : index
    %3 = vector.load %arg7[%c0, %c0_1] : memref<32x128xf32, #tpu.memory_space<vmem>>, vector<32x128xf32>
    %c0_2 = arith.constant 0 : index
    %c0_3 = arith.constant 0 : index
    %4 = vector.load %arg3[%c0_2, %c0_3] : memref<32x1024xbf16, #tpu.memory_space<vmem>>, vector<32x1024xbf16>
    %c0_4 = arith.constant 0 : index
    %c0_5 = arith.constant 0 : index
    %5 = vector.load %arg4[%c0_4, %c0_5] : memref<1024x128xbf16, #tpu.memory_space<vmem>>, vector<1024x128xbf16>
    %cst = arith.constant dense<0.000000e+00> : vector<32x128xf32>
    %6 = tpu.matmul %4, %5, %cst {dimension_numbers = #tpu.dot_dimension_numbers<[1], [0], [0], [1], [0, 0, 1, 1], [], []>} : vector<32x1024xbf16>, vector<1024x128xbf16>, vector<32x128xf32> -> vector<32x128xf32>
    %7 = arith.addf %3, %6 : vector<32x128xf32>
    %c0_6 = arith.constant 0 : index
    %c0_7 = arith.constant 0 : index
    %8 = vector.load %arg7[%c0_6, %c0_7] : memref<32x128xf32, #tpu.memory_space<vmem>>, vector<32x128xf32>
    tpu.vector_store %arg7[%c0_6, %c0_7], %7 {strides = array<i32>} : memref<32x128xf32, #tpu.memory_space<vmem>>, vector<32x128xf32>,
    %c0_i32_8 = arith.constant 0 : i32
    %9 = arith.cmpi eq, %arg2, %c0_i32_8 : i32
    %10 = arith.extui %9 : i1 to i32
    %c0_i32_9 = arith.constant 0 : i32
    %11 = arith.cmpi ne, %10, %c0_i32_9 : i32
    scf.if %11 {
      %c0_10 = arith.constant 0 : index
      %c0_11 = arith.constant 0 : index
      %12 = vector.load %arg7[%c0_10, %c0_11] : memref<32x128xf32, #tpu.memory_space<vmem>>, vector<32x128xf32>
      %c0_12 = arith.constant 0 : index
      %c0_13 = arith.constant 0 : index
      %13 = vector.load %arg5[%c0_12, %c0_13] : memref<1x128xf32, #tpu.memory_space<vmem>>, vector<1x128xf32>
      %14 = vector.broadcast %13 : vector<1x128xf32> to vector<32x128xf32>
      %15 = arith.addf %12, %14 : vector<32x128xf32>
      %cst_14 = arith.constant 0.000000e+00 : f32
      %16 = vector.broadcast %cst_14 : f32 to vector<32x128xf32>
      %17 = arith.cmpf oge, %15, %16 : vector<32x128xf32>
      %cst_15 = arith.constant 2.000000e-01 : f32
      %18 = vector.broadcast %cst_15 : f32 to vector<32x128xf32>
      %19 = arith.mulf %18, %15 : vector<32x128xf32>
      %20 = arith.select %17, %15, %19 : vector<32x128xi1>, vector<32x128xf32>
      %21 = arith.truncf %20 : vector<32x128xf32> to vector<32x128xbf16>
      %c0_16 = arith.constant 0 : index
      %c0_17 = arith.constant 0 : index
      %22 = vector.load %arg6[%c0_16, %c0_17] : memref<32x128xbf16, #tpu.memory_space<vmem>>, vector<32x128xbf16>
      tpu.vector_store %arg6[%c0_16, %c0_17], %21 {strides = array<i32>} : memref<32x128xbf16, #tpu.memory_space<vmem>>, vector<32x128xbf16>,
    } else {
    }
    return
  }
  func.func @transform_0(%arg0: i32, %arg1: i32, %arg2: i32) -> (i32, i32) {
    %c0_i32 = arith.constant 0 : i32
    return %arg0, %arg2 : i32, i32
  }
  func.func @transform_1(%arg0: i32, %arg1: i32, %arg2: i32) -> (i32, i32) {
    %c0_i32 = arith.constant 0 : i32
    return %arg2, %arg1 : i32, i32
  }
  func.func @transform_2(%arg0: i32, %arg1: i32, %arg2: i32) -> (i32, i32) {
    %c0_i32 = arith.constant 0 : i32
    %c0_i32_0 = arith.constant 0 : i32
    return %c0_i32, %arg1 : i32, i32
  }
  func.func @transform_3(%arg0: i32, %arg1: i32, %arg2: i32) -> (i32, i32) {
    %c0_i32 = arith.constant 0 : i32
    return %arg0, %arg1 : i32, i32
  }
}

module attributes {stable_mosaic.version = 11 : i64} {
  func.func @_matmul_bias_act_kernel(%arg0: i32, %arg1: i32, %arg2: i32, %arg3: memref<32x128xbf16, #tpu.memory_space<vmem>>, %arg4: memref<128x160xbf16, #tpu.memory_space<vmem>>, %arg5: memref<1x160xf32, #tpu.memory_space<vmem>>, %arg6: memref<32x160xf32, #tpu.memory_space<vmem>>, %arg7: memref<32x160xf32, #tpu.memory_space<vmem>>) attributes {dimension_semantics = [#tpu.dimension_semantics<parallel>, #tpu.dimension_semantics<parallel>, #tpu.dimension_semantics<arbitrary>], iteration_bounds = array<i64: 1, 1, 1>, scalar_prefetch = 0 : i64, scratch_operands = 1 : i64, tpu.core_type = #tpu.core_type<tc>, window_params = [{transform_indices = @transform_0, window_bounds = array<i64: 32, 128>}, {transform_indices = @transform_1, window_bounds = array<i64: 128, 160>}, {transform_indices = @transform_2, window_bounds = array<i64: 1, 160>}, {transform_indices = @transform_3, window_bounds = array<i64: 32, 160>}]} {
    %c0_i32 = arith.constant 0 : i32
    %0 = arith.cmpi eq, %arg2, %c0_i32 : i32
    %1 = arith.extui %0 : i1 to i32
    %c0_i32_0 = arith.constant 0 : i32
    %2 = arith.cmpi ne, %1, %c0_i32_0 : i32
    scf.if %2 {
      %cst_10 = arith.constant 0.000000e+00 : f32
      %12 = vector.broadcast %cst_10 : f32 to vector<32x160xf32>
      %c0_11 = arith.constant 0 : index
      %c0_12 = arith.constant 0 : index
      %13 = vector.load %arg7[%c0_11, %c0_12] : memref<32x160xf32, #tpu.memory_space<vmem>>, vector<32x160xf32>
      tpu.vector_store %arg7[%c0_11, %c0_12], %12 {strides = array<i32>} : memref<32x160xf32, #tpu.memory_space<vmem>>, vector<32x160xf32>,
    } else {
    }
    %c0 = arith.constant 0 : index
    %c0_1 = arith.constant 0 : index
    %3 = vector.load %arg7[%c0, %c0_1] : memref<32x160xf32, #tpu.memory_space<vmem>>, vector<32x160xf32>
    %c0_2 = arith.constant 0 : index
    %c0_3 = arith.constant 0 : index
    %4 = vector.load %arg3[%c0_2, %c0_3] : memref<32x128xbf16, #tpu.memory_space<vmem>>, vector<32x128xbf16>
    %c0_4 = arith.constant 0 : index
    %c0_5 = arith.constant 0 : index
    %5 = vector.load %arg4[%c0_4, %c0_5] : memref<128x160xbf16, #tpu.memory_space<vmem>>, vector<128x160xbf16>
    %cst = arith.constant dense<0.000000e+00> : vector<32x160xf32>
    %6 = tpu.matmul %4, %5, %cst {dimension_numbers = #tpu.dot_dimension_numbers<[1], [0], [0], [1], [0, 0, 1, 1], [], []>} : vector<32x128xbf16>, vector<128x160xbf16>, vector<32x160xf32> -> vector<32x160xf32>
    %7 = arith.addf %3, %6 : vector<32x160xf32>
    %c0_6 = arith.constant 0 : index
    %c0_7 = arith.constant 0 : index
    %8 = vector.load %arg7[%c0_6, %c0_7] : memref<32x160xf32, #tpu.memory_space<vmem>>, vector<32x160xf32>
    tpu.vector_store %arg7[%c0_6, %c0_7], %7 {strides = array<i32>} : memref<32x160xf32, #tpu.memory_space<vmem>>, vector<32x160xf32>,
    %c0_i32_8 = arith.constant 0 : i32
    %9 = arith.cmpi eq, %arg2, %c0_i32_8 : i32
    %10 = arith.extui %9 : i1 to i32
    %c0_i32_9 = arith.constant 0 : i32
    %11 = arith.cmpi ne, %10, %c0_i32_9 : i32
    scf.if %11 {
      %c0_10 = arith.constant 0 : index
      %c0_11 = arith.constant 0 : index
      %12 = vector.load %arg7[%c0_10, %c0_11] : memref<32x160xf32, #tpu.memory_space<vmem>>, vector<32x160xf32>
      %c0_12 = arith.constant 0 : index
      %c0_13 = arith.constant 0 : index
      %13 = vector.load %arg5[%c0_12, %c0_13] : memref<1x160xf32, #tpu.memory_space<vmem>>, vector<1x160xf32>
      %14 = vector.broadcast %13 : vector<1x160xf32> to vector<32x160xf32>
      %15 = arith.addf %12, %14 : vector<32x160xf32>
      %c0_14 = arith.constant 0 : index
      %c0_15 = arith.constant 0 : index
      %16 = vector.load %arg6[%c0_14, %c0_15] : memref<32x160xf32, #tpu.memory_space<vmem>>, vector<32x160xf32>
      tpu.vector_store %arg6[%c0_14, %c0_15], %15 {strides = array<i32>} : memref<32x160xf32, #tpu.memory_space<vmem>>, vector<32x160xf32>,
    } else {
    }
    return
  }
  func.func @transform_0(%arg0: i32, %arg1: i32, %arg2: i32) -> (i32, i32) {
    %c0_i32 = arith.constant 0 : i32
    return %arg0, %arg2 : i32, i32
  }
  func.func @transform_1(%arg0: i32, %arg1: i32, %arg2: i32) -> (i32, i32) {
    %c0_i32 = arith.constant 0 : i32
    return %arg2, %arg1 : i32, i32
  }
  func.func @transform_2(%arg0: i32, %arg1: i32, %arg2: i32) -> (i32, i32) {
    %c0_i32 = arith.constant 0 : i32
    %c0_i32_0 = arith.constant 0 : i32
    return %c0_i32, %arg1 : i32, i32
  }
  func.func @transform_3(%arg0: i32, %arg1: i32, %arg2: i32) -> (i32, i32) {
    %c0_i32 = arith.constant 0 : i32
    return %arg0, %arg1 : i32, i32
  }
}

module attributes {stable_mosaic.version = 11 : i64} {
  func.func @_flash_attn_kernel(%arg0: i32, %arg1: i32, %arg2: i32, %arg3: memref<1x1xf32, #tpu.memory_space<smem>>, %arg4: memref<1x16x16xf32, #tpu.memory_space<vmem>>, %arg5: memref<1x16x16xf32, #tpu.memory_space<vmem>>, %arg6: memref<1x16x128xf32, #tpu.memory_space<vmem>>, %arg7: memref<1x16x128xbf16, #tpu.memory_space<vmem>>, %arg8: memref<1x16x128xbf16, #tpu.memory_space<vmem>>, %arg9: memref<16x1xf32, #tpu.memory_space<vmem>>, %arg10: memref<16x1xf32, #tpu.memory_space<vmem>>, %arg11: memref<16x128xf32, #tpu.memory_space<vmem>>) attributes {dimension_semantics = [#tpu.dimension_semantics<parallel>, #tpu.dimension_semantics<parallel>, #tpu.dimension_semantics<arbitrary>], iteration_bounds = array<i64: 2, 1, 1>, scalar_prefetch = 0 : i64, scratch_operands = 3 : i64, tpu.core_type = #tpu.core_type<tc>, window_params = [{transform_indices = @transform_0, window_bounds = array<i64: 1, 1>}, {transform_indices = @transform_1, window_bounds = array<i64: 1, 16, 16>}, {transform_indices = @transform_2, window_bounds = array<i64: 1, 16, 16>}, {transform_indices = @transform_3, window_bounds = array<i64: 1, 16, 128>}, {transform_indices = @transform_4, window_bounds = array<i64: 1, 16, 128>}, {transform_indices = @transform_5, window_bounds = array<i64: 1, 16, 128>}]} {
    %c0_i32 = arith.constant 0 : i32
    %0 = arith.cmpi eq, %arg2, %c0_i32 : i32
    %1 = arith.extui %0 : i1 to i32
    %c0_i32_0 = arith.constant 0 : i32
    %2 = arith.cmpi ne, %1, %c0_i32_0 : i32
    scf.if %2 {
      %cst_26 = arith.constant 0xFF800000 : f32
      %39 = vector.broadcast %cst_26 : f32 to vector<16x1xf32>
      %c0_27 = arith.constant 0 : index
      %c0_28 = arith.constant 0 : index
      %40 = vector.load %arg9[%c0_27, %c0_28] : memref<16x1xf32, #tpu.memory_space<vmem>>, vector<16x1xf32>
      tpu.vector_store %arg9[%c0_27, %c0_28], %39 {strides = array<i32>} : memref<16x1xf32, #tpu.memory_space<vmem>>, vector<16x1xf32>,
      %cst_29 = arith.constant 0.000000e+00 : f32
      %41 = vector.broadcast %cst_29 : f32 to vector<16x1xf32>
      %c0_30 = arith.constant 0 : index
      %c0_31 = arith.constant 0 : index
      %42 = vector.load %arg10[%c0_30, %c0_31] : memref<16x1xf32, #tpu.memory_space<vmem>>, vector<16x1xf32>
      tpu.vector_store %arg10[%c0_30, %c0_31], %41 {strides = array<i32>} : memref<16x1xf32, #tpu.memory_space<vmem>>, vector<16x1xf32>,
      %cst_32 = arith.constant 0.000000e+00 : f32
      %43 = vector.broadcast %cst_32 : f32 to vector<16x128xf32>
      %c0_33 = arith.constant 0 : index
      %c0_34 = arith.constant 0 : index
      %44 = vector.load %arg11[%c0_33, %c0_34] : memref<16x128xf32, #tpu.memory_space<vmem>>, vector<16x128xf32>
      tpu.vector_store %arg11[%c0_33, %c0_34], %43 {strides = array<i32>} : memref<16x128xf32, #tpu.memory_space<vmem>>, vector<16x128xf32>,
    } else {
    }
    %c0 = arith.constant 0 : index
    %c0_1 = arith.constant 0 : index
    %c0_2 = arith.constant 0 : index
    %3 = vector.load %arg4[%c0, %c0_1, %c0_2] : memref<1x16x16xf32, #tpu.memory_space<vmem>>, vector<1x16x16xf32>
    %4 = vector.shape_cast %3 : vector<1x16x16xf32> to vector<16x16xf32>
    %5 = arith.truncf %4 : vector<16x16xf32> to vector<16x16xbf16>
    %c0_3 = arith.constant 0 : index
    %c0_4 = arith.constant 0 : index
    %c0_5 = arith.constant 0 : index
    %6 = vector.load %arg5[%c0_3, %c0_4, %c0_5] : memref<1x16x16xf32, #tpu.memory_space<vmem>>, vector<1x16x16xf32>
    %7 = vector.shape_cast %6 : vector<1x16x16xf32> to vector<16x16xf32>
    %8 = arith.truncf %7 : vector<16x16xf32> to vector<16x16xbf16>
    %c0_6 = arith.constant 0 : index
    %c0_7 = arith.constant 0 : index
    %c0_8 = arith.constant 0 : index
    %9 = vector.load %arg6[%c0_6, %c0_7, %c0_8] : memref<1x16x128xf32, #tpu.memory_space<vmem>>, vector<1x16x128xf32>
    %10 = vector.shape_cast %9 : vector<1x16x128xf32> to vector<16x128xf32>
    %11 = arith.truncf %10 : vector<16x128xf32> to vector<16x128xbf16>
    %cst = arith.constant dense<0.000000e+00> : vector<16x16xf32>
    %12 = tpu.matmul %5, %8, %cst {dimension_numbers = #tpu.dot_dimension_numbers<[1], [1], [0], [0], [0, 0, 1, 0], [], []>} : vector<16x16xbf16>, vector<16x16xbf16>, vector<16x16xf32> -> vector<16x16xf32>
    %c0_9 = arith.constant 0 : index
    %c0_10 = arith.constant 0 : index
    %13 = vector.load %arg9[%c0_9, %c0_10] : memref<16x1xf32, #tpu.memory_space<vmem>>, vector<16x1xf32>
    %cst_11 = arith.constant dense<0xFF800000> : vector<16xf32>
    %14 = vector.multi_reduction <maximumf>, %12, %cst_11 [1] : vector<16x16xf32> to vector<16xf32>
    %15 = vector.shape_cast %14 : vector<16xf32> to vector<16x1xf32>
    %16 = arith.maximumf %13, %15 : vector<16x1xf32>
    %17 = arith.subf %13, %16 : vector<16x1xf32>
    %18 = math.exp %17 : vector<16x1xf32>
    %19 = vector.broadcast %16 : vector<16x1xf32> to vector<16x16xf32>
    %20 = arith.subf %12, %19 : vector<16x16xf32>
    %21 = math.exp %20 : vector<16x16xf32>
    %c0_12 = arith.constant 0 : index
    %c0_13 = arith.constant 0 : index
    %22 = vector.load %arg10[%c0_12, %c0_13] : memref<16x1xf32, #tpu.memory_space<vmem>>, vector<16x1xf32>
    %23 = arith.mulf %18, %22 : vector<16x1xf32>
    %cst_14 = arith.constant dense<0.000000e+00> : vector<16xf32>
    %24 = vector.multi_reduction <add>, %21, %cst_14 [1] : vector<16x16xf32> to vector<16xf32>
    %25 = vector.shape_cast %24 : vector<16xf32> to vector<16x1xf32>
    %26 = arith.addf %23, %25 : vector<16x1xf32>
    %c0_15 = arith.constant 0 : index
    %c0_16 = arith.constant 0 : index
    %27 = vector.load %arg10[%c0_15, %c0_16] : memref<16x1xf32, #tpu.memory_space<vmem>>, vector<16x1xf32>
    tpu.vector_store %arg10[%c0_15, %c0_16], %26 {strides = array<i32>} : memref<16x1xf32, #tpu.memory_space<vmem>>, vector<16x1xf32>,
    %c0_17 = arith.constant 0 : index
    %c0_18 = arith.constant 0 : index
    %28 = vector.load %arg11[%c0_17, %c0_18] : memref<16x128xf32, #tpu.memory_space<vmem>>, vector<16x128xf32>
    %29 = vector.broadcast %18 : vector<16x1xf32> to vector<16x128xf32>
    %30 = arith.mulf %29, %28 : vector<16x128xf32>
    %31 = arith.truncf %21 : vector<16x16xf32> to vector<16x16xbf16>
    %cst_19 = arith.constant dense<0.000000e+00> : vector<16x128xf32>
    %32 = tpu.matmul %31, %11, %cst_19 {dimension_numbers = #tpu.dot_dimension_numbers<[1], [0], [0], [1], [0, 0, 1, 1], [], []>} : vector<16x16xbf16>, vector<16x128xbf16>, vector<16x128xf32> -> vector<16x128xf32>
    %33 = arith.addf %30, %32 : vector<16x128xf32>
    %c0_20 = arith.constant 0 : index
    %c0_21 = arith.constant 0 : index
    %34 = vector.load %arg11[%c0_20, %c0_21] : memref<16x128xf32, #tpu.memory_space<vmem>>, vector<16x128xf32>
    tpu.vector_store %arg11[%c0_20, %c0_21], %33 {strides = array<i32>} : memref<16x128xf32, #tpu.memory_space<vmem>>, vector<16x128xf32>,
    %c0_22 = arith.constant 0 : index
    %c0_23 = arith.constant 0 : index
    %35 = vector.load %arg9[%c0_22, %c0_23] : memref<16x1xf32, #tpu.memory_space<vmem>>, vector<16x1xf32>
    tpu.vector_store %arg9[%c0_22, %c0_23], %16 {strides = array<i32>} : memref<16x1xf32, #tpu.memory_space<vmem>>, vector<16x1xf32>,
    %c0_i32_24 = arith.constant 0 : i32
    %36 = arith.cmpi eq, %arg2, %c0_i32_24 : i32
    %37 = arith.extui %36 : i1 to i32
    %c0_i32_25 = arith.constant 0 : i32
    %38 = arith.cmpi ne, %37, %c0_i32_25 : i32
    scf.if %38 {
      %c0_26 = arith.constant 0 : index
      %c0_27 = arith.constant 0 : index
      %39 = memref.load %arg3[%c0_26, %c0_27] : memref<1x1xf32, #tpu.memory_space<smem>>
      %c0_28 = arith.constant 0 : index
      %c0_29 = arith.constant 0 : index
      %40 = vector.load %arg11[%c0_28, %c0_29] : memref<16x128xf32, #tpu.memory_space<vmem>>, vector<16x128xf32>
      %c0_30 = arith.constant 0 : index
      %c0_31 = arith.constant 0 : index
      %41 = vector.load %arg10[%c0_30, %c0_31] : memref<16x1xf32, #tpu.memory_space<vmem>>, vector<16x1xf32>
      %42 = tpu.reciprocal %41 {approx = true} : vector<16x1xf32> -> vector<16x1xf32>
      %43 = vector.broadcast %42 : vector<16x1xf32> to vector<16x128xf32>
      %44 = arith.mulf %40, %43 : vector<16x128xf32>
      %45 = vector.broadcast %39 : f32 to vector<16x128xf32>
      %46 = arith.mulf %45, %44 : vector<16x128xf32>
      %c0_32 = arith.constant 0 : index
      %c0_33 = arith.constant 0 : index
      %c0_34 = arith.constant 0 : index
      %47 = vector.load %arg7[%c0_32, %c0_33, %c0_34] : memref<1x16x128xbf16, #tpu.memory_space<vmem>>, vector<1x16x128xbf16>
      %48 = vector.shape_cast %47 : vector<1x16x128xbf16> to vector<16x128xbf16>
      %49 = arith.extf %48 : vector<16x128xbf16> to vector<16x128xf32>
      %50 = arith.addf %46, %49 : vector<16x128xf32>
      %51 = arith.truncf %50 : vector<16x128xf32> to vector<16x128xbf16>
      %c0_35 = arith.constant 0 : index
      %c0_36 = arith.constant 0 : index
      %c0_37 = arith.constant 0 : index
      %52 = vector.load %arg8[%c0_35, %c0_36, %c0_37] : memref<1x16x128xbf16, #tpu.memory_space<vmem>>, vector<1x16x128xbf16>
      %53 = vector.shape_cast %52 : vector<1x16x128xbf16> to vector<16x128xbf16>
      %54 = vector.shape_cast %51 : vector<16x128xbf16> to vector<1x16x128xbf16>
      tpu.vector_store %arg8[%c0_35, %c0_36, %c0_37], %54 {strides = array<i32>} : memref<1x16x128xbf16, #tpu.memory_space<vmem>>, vector<1x16x128xbf16>,
    } else {
    }
    return
  }
  func.func @transform_0(%arg0: i32, %arg1: i32, %arg2: i32) -> (i32, i32) {
    %c0_i32 = arith.constant 0 : i32
    %c0_i32_0 = arith.constant 0 : i32
    %c0_i32_1 = arith.constant 0 : i32
    return %c0_i32, %c0_i32_0 : i32, i32
  }
  func.func @transform_1(%arg0: i32, %arg1: i32, %arg2: i32) -> (i32, i32, i32) {
    %c0_i32 = arith.constant 0 : i32
    %c0_i32_0 = arith.constant 0 : i32
    return %arg0, %arg1, %c0_i32 : i32, i32, i32
  }
  func.func @transform_2(%arg0: i32, %arg1: i32, %arg2: i32) -> (i32, i32, i32) {
    %c0_i32 = arith.constant 0 : i32
    %c0_i32_0 = arith.constant 0 : i32
    return %arg0, %arg2, %c0_i32 : i32, i32, i32
  }
  func.func @transform_3(%arg0: i32, %arg1: i32, %arg2: i32) -> (i32, i32, i32) {
    %c0_i32 = arith.constant 0 : i32
    %c0_i32_0 = arith.constant 0 : i32
    return %arg0, %arg2, %c0_i32 : i32, i32, i32
  }
  func.func @transform_4(%arg0: i32, %arg1: i32, %arg2: i32) -> (i32, i32, i32) {
    %c0_i32 = arith.constant 0 : i32
    %c0_i32_0 = arith.constant 0 : i32
    return %arg0, %arg1, %c0_i32 : i32, i32, i32
  }
  func.func @transform_5(%arg0: i32, %arg1: i32, %arg2: i32) -> (i32, i32, i32) {
    %c0_i32 = arith.constant 0 : i32
    %c0_i32_0 = arith.constant 0 : i32
    return %arg0, %arg1, %c0_i32 : i32, i32, i32
  }
}

module attributes {stable_mosaic.version = 11 : i64} {
  func.func @_conv_oc1_kernel(%arg0: i32, %arg1: memref<128x2048xbf16, #tpu.memory_space<vmem>>, %arg2: memref<1x2048xbf16, #tpu.memory_space<vmem>>, %arg3: memref<1x1xf32, #tpu.memory_space<smem>>, %arg4: memref<1x128xf32, #tpu.memory_space<vmem>>) attributes {dimension_semantics = [#tpu.dimension_semantics<parallel>], iteration_bounds = array<i64: 1>, scalar_prefetch = 0 : i64, scratch_operands = 0 : i64, tpu.core_type = #tpu.core_type<tc>, window_params = [{transform_indices = @transform_0, window_bounds = array<i64: 128, 2048>}, {pipeline_mode = #tpu.pipeline_mode<synchronous>, transform_indices = @transform_1, window_bounds = array<i64: 1, 2048>}, {transform_indices = @transform_2, window_bounds = array<i64: 1, 1>}, {transform_indices = @transform_3, window_bounds = array<i64: 1, 128>}]} {
    %c0 = arith.constant 0 : index
    %c0_0 = arith.constant 0 : index
    %0 = vector.load %arg2[%c0, %c0_0] : memref<1x2048xbf16, #tpu.memory_space<vmem>>, vector<1x2048xbf16>
    %c0_1 = arith.constant 0 : index
    %c0_2 = arith.constant 0 : index
    %1 = vector.load %arg1[%c0_1, %c0_2] : memref<128x2048xbf16, #tpu.memory_space<vmem>>, vector<128x2048xbf16>
    %cst = arith.constant dense<0.000000e+00> : vector<1x128xf32>
    %2 = tpu.matmul %0, %1, %cst {dimension_numbers = #tpu.dot_dimension_numbers<[1], [1], [0], [0], [0, 0, 1, 0], [], []>} : vector<1x2048xbf16>, vector<128x2048xbf16>, vector<1x128xf32> -> vector<1x128xf32>
    %c0_3 = arith.constant 0 : index
    %c0_4 = arith.constant 0 : index
    %3 = memref.load %arg3[%c0_3, %c0_4] : memref<1x1xf32, #tpu.memory_space<smem>>
    %4 = vector.broadcast %3 : f32 to vector<1x128xf32>
    %5 = arith.addf %2, %4 : vector<1x128xf32>
    %c0_5 = arith.constant 0 : index
    %c0_6 = arith.constant 0 : index
    %6 = vector.load %arg4[%c0_5, %c0_6] : memref<1x128xf32, #tpu.memory_space<vmem>>, vector<1x128xf32>
    tpu.vector_store %arg4[%c0_5, %c0_6], %5 {strides = array<i32>} : memref<1x128xf32, #tpu.memory_space<vmem>>, vector<1x128xf32>,
    return
  }
  func.func @transform_0(%arg0: i32) -> (i32, i32) {
    %c0_i32 = arith.constant 0 : i32
    %c0_i32_0 = arith.constant 0 : i32
    return %arg0, %c0_i32 : i32, i32
  }
  func.func @transform_1(%arg0: i32) -> (i32, i32) {
    %c0_i32 = arith.constant 0 : i32
    %c0_i32_0 = arith.constant 0 : i32
    %c0_i32_1 = arith.constant 0 : i32
    return %c0_i32, %c0_i32_0 : i32, i32
  }
  func.func @transform_2(%arg0: i32) -> (i32, i32) {
    %c0_i32 = arith.constant 0 : i32
    %c0_i32_0 = arith.constant 0 : i32
    %c0_i32_1 = arith.constant 0 : i32
    return %c0_i32, %c0_i32_0 : i32, i32
  }
  func.func @transform_3(%arg0: i32) -> (i32, i32) {
    %c0_i32 = arith.constant 0 : i32
    %c0_i32_0 = arith.constant 0 : i32
    return %c0_i32, %arg0 : i32, i32
  }
}

</mosaic_0001>

<bundles_post_ra>
// kernel: discriminator_forward.5
= control target key start
LH: loop header
LB: loop body
LE: loop exit
PB: predicated region body
PF: predicated region fallthrough
CT: control target
= control target key end

     0   :  { %vm19_vm0 = vcmask 523264   ;;  %v437_v1 = vmov 0.0   ;;  %vm132_vm1 = vcmask 392192   ;;  %vm342_vm4 = vcmask 519168   ;;  %s616_s1 = inlined_call_operand.vmem [shape: bf16[48,64], index: 1, kind: input, shape index: {}]   ;;  %s617_s2 = inlined_call_operand.vmem [shape: f32[1,64], index: 2, kind: input, shape index: {}]   ;;  %s618_s0 = inlined_call_operand.vmem [shape: bf16[128,48], index: 0, kind: input, shape index: {}]   ;;  %s619_s3 = inlined_call_operand.vmem [shape: bf16[128,64], index: 3, kind: output, shape index: {}]  }
   0x1   :  { %v425_v0 = vld [vmem:[%s616_s1 + $0x10] sm:$0xff]  ;;  %20 = vst.msk [vmem:[#allocation2] sm:$0xff] %vm19_vm0, %v437_v1  ;;  %v424_v2 = vld [vmem:[%s616_s1 + $0x8] sm:$0xff]  ;;  %v423_v3 = vld [vmem:[%s616_s1] sm:$0xff] }
   0x2   :  { %21 = vst.msk [vmem:[#allocation2 + $0x8] sm:$0xff] %vm19_vm0, %v437_v1  ;;  %162 = vmatpush.bf16.msra.mxu0 %v425_v0  ;;  %426 = vmatpush.bf16.msra.mxu1 %v425_v0  ;;  %v415_v4 = vld [vmem:[%s618_s0] sm:$0xff]  ;;  %v417_v5 = vld [vmem:[%s618_s0 + $0x10] sm:$0xff]  ;;  %v416_v8 = vld [vmem:[%s618_s0 + $0x8] sm:$0xff] }
   0x3   :  { %22 = vst.msk [vmem:[#allocation2 + $0x10] sm:$0xff] %vm19_vm0, %v437_v1  ;;  %427 = vmatpush.bf16.msra.mxu2 %v425_v0  ;;  %428 = vmatpush.bf16.msra.mxu3 %v425_v0  ;;  %v419_v6 = vld [vmem:[%s618_s0 + $0x20] sm:$0xff]  ;;  %v421_v7 = vld [vmem:[%s618_s0 + $0x30] sm:$0xff]  ;;  %v418_v9 = vld [vmem:[%s618_s0 + $0x18] sm:$0xff] }
   0x4   :  { %23 = vst.msk [vmem:[#allocation2 + $0x18] sm:$0xff] %vm19_vm0, %v437_v1  ;;  %v420_v10 = vld [vmem:[%s618_s0 + $0x28] sm:$0xff]  ;;  %v422_v11 = vld [vmem:[%s618_s0 + $0x38] sm:$0xff]  ;;  %v520_v22 = vld [vmem:[%s617_s2] ss:$0 sm:$0xff] }
   0x5   :  { %24 = vst.msk [vmem:[#allocation2 + $0x20] sm:$0xff] %vm19_vm0, %v437_v1 }
   0x6   :  { %25 = vst.msk [vmem:[#allocation2 + $0x28] sm:$0xff] %vm19_vm0, %v437_v1  ;;  %163 = vmatpush.bf16.msra.mxu0 %v424_v2  ;;  %429 = vmatpush.bf16.msra.mxu1 %v424_v2 }
   0x7   :  { %26 = vst.msk [vmem:[#allocation2 + $0x30] sm:$0xff] %vm19_vm0, %v437_v1  ;;  %430 = vmatpush.bf16.msra.mxu2 %v424_v2  ;;  %431 = vmatpush.bf16.msra.mxu3 %v424_v2 }
   0x8   :  { %27 = vst.msk [vmem:[#allocation2 + $0x38] sm:$0xff] %vm19_vm0, %v437_v1  ;;  %v36_v12 = vld [vmem:[#allocation2] sm:$0xff] }
   0x9   :  { %28 = vst.msk [vmem:[#allocation2 + $0x40] sm:$0xff] %vm19_vm0, %v437_v1  ;;  %v37_v20 = vld [vmem:[#allocation2 + $0x8] sm:$0xff] }
   0xa   :  { %29 = vst.msk [vmem:[#allocation2 + $0x48] sm:$0xff] %vm19_vm0, %v437_v1  ;;  %164 = vmatpush.bf16.msra.mxu0 %v423_v3  ;;  %432 = vmatpush.bf16.msra.mxu1 %v423_v3  ;;  %v38_v42 = vld [vmem:[#allocation2 + $0x10] sm:$0xff] }
   0xb   :  { %30 = vst.msk [vmem:[#allocation2 + $0x50] sm:$0xff] %vm19_vm0, %v437_v1  ;;  %433 = vmatpush.bf16.msra.mxu2 %v423_v3  ;;  %434 = vmatpush.bf16.msra.mxu3 %v423_v3 }
   0xc   :  { %31 = vst.msk [vmem:[#allocation2 + $0x58] sm:$0xff] %vm19_vm0, %v437_v1  ;;  %v40_v13 = vld [vmem:[#allocation2 + $0x20] sm:$0xff] }
   0xd   :  { %32 = vst.msk [vmem:[#allocation2 + $0x60] sm:$0xff] %vm19_vm0, %v437_v1  ;;  %407 = vmatmul.msk.bf16.vlgmr.msra.gmra.mxu0 %vm132_vm1, %v415_v4  ;;  %409 = vmatmul.msk.bf16.vlgmr.msra.gmra.mxu1 %vm132_vm1, %v417_v5  ;;  %v41_v21 = vld [vmem:[#allocation2 + $0x28] sm:$0xff] }
   0xe   :  { %33 = vst.msk [vmem:[#allocation2 + $0x68] sm:$0xff] %vm19_vm0, %v437_v1  ;;  %411 = vmatmul.msk.bf16.vlgmr.msra.gmra.mxu2 %vm132_vm1, %v419_v6  ;;  %413 = vmatmul.msk.bf16.vlgmr.msra.gmra.mxu3 %vm132_vm1, %v421_v7  ;;  %v42_v47 = vld [vmem:[#allocation2 + $0x30] sm:$0xff] }
   0xf   :  { %34 = vst.msk [vmem:[#allocation2 + $0x70] sm:$0xff] %vm19_vm0, %v437_v1 }
  0x10   :  { %35 = vst.msk [vmem:[#allocation2 + $0x78] sm:$0xff] %vm19_vm0, %v437_v1  ;;  %v44_v18 = vld [vmem:[#allocation2 + $0x40] sm:$0xff] }
  0x11   :  { %v45_v36 = vld [vmem:[#allocation2 + $0x48] sm:$0xff] }
  0x12   :  { %v46_v1 = vld [vmem:[#allocation2 + $0x50] sm:$0xff] }
  0x14   :  { %v48_v19 = vld [vmem:[#allocation2 + $0x60] sm:$0xff] }
  0x15   :  { %v49_v38 = vld [vmem:[#allocation2 + $0x68] sm:$0xff] }
  0x16   :  { %v50_v6 = vld [vmem:[#allocation2 + $0x70] sm:$0xff] }
  0x1d   :  { %408 = vmatmul.msk.bf16.gmra.mxu0 %vm132_vm1, %v416_v8  ;;  %410 = vmatmul.msk.bf16.gmra.mxu1 %vm132_vm1, %v418_v9 }
  0x1e   :  { %412 = vmatmul.msk.bf16.gmra.mxu2 %vm132_vm1, %v420_v10  ;;  %414 = vmatmul.msk.bf16.gmra.mxu3 %vm132_vm1, %v422_v11  ;;  %v39_v10 = vld [vmem:[#allocation2 + $0x18] sm:$0xff] }
  0x8a   :  { %v166_v14 = vpop.f32.mrf.mxu0  ;;  %v176_v15 = vpop.f32.mrf.mxu1 }
  0x8b   :  { %v206_v16 = vadd.f32 %v166_v14, %v36_v12  ;;  %v210_v17 = vadd.f32 %v176_v15, %v40_v13  ;;  %v43_v15 = vld [vmem:[#allocation2 + $0x38] sm:$0xff] }
  0x8d   :  { %223 = vst.msk [vmem:[#allocation2] sm:$0xff] %vm19_vm0, %v206_v16 }
  0x8e   :  { %227 = vst.msk [vmem:[#allocation2 + $0x20] sm:$0xff] %vm19_vm0, %v210_v17 }
  0x91   :  { %v186_v23 = vpop.f32.mrf.mxu2  ;;  %v196_v24 = vpop.f32.mrf.mxu3 }
  0x92   :  { %v214_v25 = vadd.f32 %v186_v23, %v44_v18  ;;  %v218_v26 = vadd.f32 %v196_v24, %v48_v19  ;;  %v168_v27 = vpop.f32.mrf.mxu0  ;;  %v178_v28 = vpop.f32.mrf.mxu1 }
  0x93   :  { %v207_v29 = vadd.f32 %v168_v27, %v37_v20  ;;  %v211_v30 = vadd.f32 %v178_v28, %v41_v21  ;;  %v47_v27 = vld [vmem:[#allocation2 + $0x58] sm:$0xff] }
  0x94   :  { %v242_v31 = vld [vmem:[#allocation2] sm:$0xff]  ;;  %231 = vst.msk [vmem:[#allocation2 + $0x40] sm:$0xff] %vm19_vm0, %v214_v25 }
  0x95   :  { %v262_v32 = vadd.f32 %v520_v22, %v242_v31  ;;  %v246_v33 = vld [vmem:[#allocation2 + $0x20] sm:$0xff]  ;;  %235 = vst.msk [vmem:[#allocation2 + $0x60] sm:$0xff] %vm19_vm0, %v218_v26 }
  0x96   :  { %v266_v34 = vadd.f32 %v520_v22, %v246_v33  ;;  %224 = vst.msk [vmem:[#allocation2 + $0x8] sm:$0xff] %vm19_vm0, %v207_v29 }
  0x97   :  { %vm278_vm2 = vcmp.ge.f32.partialorder %v262_v32, 0.0  ;;  %v294_v35 = vmul.f32 0.2, %v262_v32  ;;  %228 = vst.msk [vmem:[#allocation2 + $0x28] sm:$0xff] %vm19_vm0, %v211_v30 }
  0x98   :  { %vm282_vm3 = vcmp.ge.f32.partialorder %v266_v34, 0.0  ;;  %v298_v37 = vmul.f32 0.2, %v266_v34 }
  0x99   :  { %v310_v39 = vsel %vm278_vm2, %v262_v32, %v294_v35  ;;  %v188_v40 = vpop.f32.mrf.mxu2  ;;  %v198_v41 = vpop.f32.mrf.mxu3 }
  0x9a   :  { %v326_v43 = vpack.c.bf16 %v310_v39, %v310_v39  ;;  %v314_v44 = vsel %vm282_vm3, %v266_v34, %v298_v37  ;;  %v215_v45 = vadd.f32 %v188_v40, %v45_v36  ;;  %v171_v46 = vpop.f32.mrf.mxu0  ;;  %v181_v48 = vpop.f32.mrf.mxu1  ;;  %v219_v51 = vadd.f32 %v198_v41, %v49_v38  ;;  %v51_v37 = vld [vmem:[#allocation2 + $0x78] sm:$0xff] }
  0x9b   :  { %v330_v49 = vpack.c.bf16 %v314_v44, %v314_v44  ;;  %v250_v50 = vld [vmem:[#allocation2 + $0x40] sm:$0xff]  ;;  %v208_v54 = vadd.f32 %v171_v46, %v38_v42  ;;  %v212_v57 = vadd.f32 %v181_v48, %v42_v47 }
  0x9c   :  { %343 = vst.msk [vmem:[%s619_s3] sm:$0xf] %vm342_vm4, %v326_v43  ;;  %v270_v52 = vadd.f32 %v520_v22, %v250_v50  ;;  %v254_v53 = vld [vmem:[#allocation2 + $0x60] sm:$0xff] }
  0x9d   :  { %347 = vst.msk [vmem:[%s619_s3 + $0x10] sm:$0xf] %vm342_vm4, %v330_v49  ;;  %v274_v55 = vadd.f32 %v520_v22, %v254_v53  ;;  %v243_v56 = vld [vmem:[#allocation2 + $0x8] sm:$0xff] }
  0x9e   :  { %vm286_vm5 = vcmp.ge.f32.partialorder %v270_v52, 0.0  ;;  %v302_v58 = vmul.f32 0.2, %v270_v52  ;;  %v263_v59 = vadd.f32 %v520_v22, %v243_v56  ;;  %v247_v60 = vld [vmem:[#allocation2 + $0x28] sm:$0xff]  ;;  %232 = vst.msk [vmem:[#allocation2 + $0x48] sm:$0xff] %vm19_vm0, %v215_v45 }
  0x9f   :  { %vm290_vm6 = vcmp.ge.f32.partialorder %v274_v55, 0.0  ;;  %v306_v61 = vmul.f32 0.2, %v274_v55  ;;  %v267_v62 = vadd.f32 %v520_v22, %v247_v60  ;;  %236 = vst.msk [vmem:[#allocation2 + $0x68] sm:$0xff] %vm19_vm0, %v219_v51 }
  0xa0   :  { %v318_v63 = vsel %vm286_vm5, %v270_v52, %v302_v58  ;;  %vm279_vm7 = vcmp.ge.f32.partialorder %v263_v59, 0.0  ;;  %v295_v0 = vmul.f32 0.2, %v263_v59  ;;  %225 = vst.msk [vmem:[#allocation2 + $0x10] sm:$0xff] %vm19_vm0, %v208_v54 }
  0xa1   :  { %v334_v2 = vpack.c.bf16 %v318_v63, %v318_v63  ;;  %v322_v3 = vsel %vm290_vm6, %v274_v55, %v306_v61  ;;  %vm283_vm8 = vcmp.ge.f32.partialorder %v267_v62, 0.0  ;;  %v299_v4 = vmul.f32 0.2, %v267_v62  ;;  %229 = vst.msk [vmem:[#allocation2 + $0x30] sm:$0xff] %vm19_vm0, %v212_v57  ;;  %v191_v5 = vpop.f32.mrf.mxu2  ;;  %v201_v7 = vpop.f32.mrf.mxu3 }
  0xa2   :  { %v338_v8 = vpack.c.bf16 %v322_v3, %v322_v3  ;;  %v311_v9 = vsel %vm279_vm7, %v263_v59, %v295_v0  ;;  %v173_v11 = vpop.f32.mrf.mxu0  ;;  %v216_v14 = vadd.f32 %v191_v5, %v46_v1  ;;  %v183_v16 = vpop.f32.mrf.mxu1  ;;  %v220_v18 = vadd.f32 %v201_v7, %v50_v6 }
  0xa3   :  { %351 = vst.msk [vmem:[%s619_s3 + $0x20] sm:$0xf] %vm342_vm4, %v334_v2  ;;  %v327_v12 = vpack.c.bf16 %v311_v9, %v311_v9  ;;  %v315_v13 = vsel %vm283_vm8, %v267_v62, %v299_v4  ;;  %v209_v20 = vadd.f32 %v173_v11, %v39_v10  ;;  %v213_v24 = vadd.f32 %v183_v16, %v43_v15 }
  0xa4   :  { %355 = vst.msk [vmem:[%s619_s3 + $0x30] sm:$0xf] %vm342_vm4, %v338_v8  ;;  %v331_v17 = vpack.c.bf16 %v315_v13, %v315_v13 }
  0xa5   :  { %344 = vst.msk [vmem:[%s619_s3 + $0x4] sm:$0xf] %vm342_vm4, %v327_v12  ;;  %v251_v19 = vld [vmem:[#allocation2 + $0x48] sm:$0xff] }
  0xa6   :  { %348 = vst.msk [vmem:[%s619_s3 + $0x14] sm:$0xf] %vm342_vm4, %v331_v17  ;;  %v271_v21 = vadd.f32 %v520_v22, %v251_v19  ;;  %v255_v23 = vld [vmem:[#allocation2 + $0x68] sm:$0xff] }
  0xa7   :  { %v275_v25 = vadd.f32 %v520_v22, %v255_v23  ;;  %v244_v26 = vld [vmem:[#allocation2 + $0x10] sm:$0xff]  ;;  %233 = vst.msk [vmem:[#allocation2 + $0x50] sm:$0xff] %vm19_vm0, %v216_v14 }
  0xa8   :  { %vm287_vm9 = vcmp.ge.f32.partialorder %v271_v21, 0.0  ;;  %v303_v28 = vmul.f32 0.2, %v271_v21  ;;  %v264_v29 = vadd.f32 %v520_v22, %v244_v26  ;;  %v248_v30 = vld [vmem:[#allocation2 + $0x30] sm:$0xff]  ;;  %237 = vst.msk [vmem:[#allocation2 + $0x70] sm:$0xff] %vm19_vm0, %v220_v18 }
  0xa9   :  { %vm291_vm10 = vcmp.ge.f32.partialorder %v275_v25, 0.0  ;;  %v307_v31 = vmul.f32 0.2, %v275_v25  ;;  %v268_v32 = vadd.f32 %v520_v22, %v248_v30  ;;  %226 = vst.msk [vmem:[#allocation2 + $0x18] sm:$0xff] %vm19_vm0, %v209_v20  ;;  %v193_v33 = vpop.f32.mrf.mxu2  ;;  %v203_v38 = vpop.f32.mrf.mxu3 }
  0xaa   :  { %v319_v34 = vsel %vm287_vm9, %v271_v21, %v303_v28  ;;  %vm280_vm11 = vcmp.ge.f32.partialorder %v264_v29, 0.0  ;;  %v296_v35 = vmul.f32 0.2, %v264_v29  ;;  %230 = vst.msk [vmem:[#allocation2 + $0x38] sm:$0xff] %vm19_vm0, %v213_v24  ;;  %v217_v36 = vadd.f32 %v193_v33, %v47_v27 }
  0xab   :  { %v335_v39 = vpack.c.bf16 %v319_v34, %v319_v34  ;;  %v323_v40 = vsel %vm291_vm10, %v275_v25, %v307_v31  ;;  %vm284_vm12 = vcmp.ge.f32.partialorder %v268_v32, 0.0  ;;  %v300_v41 = vmul.f32 0.2, %v268_v32 }
  0xac   :  { %v339_v42 = vpack.c.bf16 %v323_v40, %v323_v40  ;;  %v312_v43 = vsel %vm280_vm11, %v264_v29, %v296_v35  ;;  %234 = vst.msk [vmem:[#allocation2 + $0x58] sm:$0xff] %vm19_vm0, %v217_v36  ;;  %v221_v46 = vadd.f32 %v203_v38, %v51_v37 }
  0xad   :  { %352 = vst.msk [vmem:[%s619_s3 + $0x24] sm:$0xf] %vm342_vm4, %v335_v39  ;;  %v328_v44 = vpack.c.bf16 %v312_v43, %v312_v43  ;;  %v316_v45 = vsel %vm284_vm12, %v268_v32, %v300_v41 }
  0xae   :  { %356 = vst.msk [vmem:[%s619_s3 + $0x34] sm:$0xf] %vm342_vm4, %v339_v42  ;;  %v332_v47 = vpack.c.bf16 %v316_v45, %v316_v45  ;;  %v252_v48 = vld [vmem:[#allocation2 + $0x50] sm:$0xff] }
  0xaf   :  { %345 = vst.msk [vmem:[%s619_s3 + $0x8] sm:$0xf] %vm342_vm4, %v328_v44  ;;  %v272_v49 = vadd.f32 %v520_v22, %v252_v48  ;;  %v256_v50 = vld [vmem:[#allocation2 + $0x70] sm:$0xff] }
  0xb0   :  { %349 = vst.msk [vmem:[%s619_s3 + $0x18] sm:$0xf] %vm342_vm4, %v332_v47  ;;  %v276_v51 = vadd.f32 %v520_v22, %v256_v50  ;;  %v245_v52 = vld [vmem:[#allocation2 + $0x18] sm:$0xff] }
  0xb1   :  { %vm288_vm13 = vcmp.ge.f32.partialorder %v272_v49, 0.0  ;;  %v304_v53 = vmul.f32 0.2, %v272_v49  ;;  %v265_v54 = vadd.f32 %v520_v22, %v245_v52  ;;  %v249_v55 = vld [vmem:[#allocation2 + $0x38] sm:$0xff]  ;;  %238 = vst.msk [vmem:[#allocation2 + $0x78] sm:$0xff] %vm19_vm0, %v221_v46 }
  0xb2   :  { %vm292_vm14 = vcmp.ge.f32.partialorder %v276_v51, 0.0  ;;  %v308_v56 = vmul.f32 0.2, %v276_v51  ;;  %v269_v57 = vadd.f32 %v520_v22, %v249_v55 }
  0xb3   :  { %v320_v58 = vsel %vm288_vm13, %v272_v49, %v304_v53  ;;  %vm281_vm15 = vcmp.ge.f32.partialorder %v265_v54, 0.0  ;;  %v297_v59 = vmul.f32 0.2, %v265_v54  ;;  %v253_v60 = vld [vmem:[#allocation2 + $0x58] sm:$0xff] }
  0xb4   :  { %v336_v61 = vpack.c.bf16 %v320_v58, %v320_v58  ;;  %v324_v62 = vsel %vm292_vm14, %v276_v51, %v308_v56  ;;  %vm285_vm1 = vcmp.ge.f32.partialorder %v269_v57, 0.0  ;;  %v301_v63 = vmul.f32 0.2, %v269_v57 }
  0xb5   :  { %v340_v0 = vpack.c.bf16 %v324_v62, %v324_v62  ;;  %v313_v1 = vsel %vm281_vm15, %v265_v54, %v297_v59  ;;  %v273_v2 = vadd.f32 %v520_v22, %v253_v60 }
  0xb6   :  { %353 = vst.msk [vmem:[%s619_s3 + $0x28] sm:$0xf] %vm342_vm4, %v336_v61  ;;  %v329_v3 = vpack.c.bf16 %v313_v1, %v313_v1  ;;  %v317_v4 = vsel %vm285_vm1, %v269_v57, %v301_v63 }
  0xb7   :  { %357 = vst.msk [vmem:[%s619_s3 + $0x38] sm:$0xf] %vm342_vm4, %v340_v0  ;;  %v333_v5 = vpack.c.bf16 %v317_v4, %v317_v4  ;;  %vm289_vm0 = vcmp.ge.f32.partialorder %v273_v2, 0.0  ;;  %v305_v6 = vmul.f32 0.2, %v273_v2 }
  0xb8   :  { %346 = vst.msk [vmem:[%s619_s3 + $0xc] sm:$0xf] %vm342_vm4, %v329_v3  ;;  %v257_v7 = vld [vmem:[#allocation2 + $0x78] sm:$0xff] }
  0xb9   :  { %350 = vst.msk [vmem:[%s619_s3 + $0x1c] sm:$0xf] %vm342_vm4, %v333_v5  ;;  %v321_v8 = vsel %vm289_vm0, %v273_v2, %v305_v6  ;;  %v277_v9 = vadd.f32 %v520_v22, %v257_v7 }
  0xba   :  { %v337_v10 = vpack.c.bf16 %v321_v8, %v321_v8 }
  0xbb   :  { %vm293_vm2 = vcmp.ge.f32.partialorder %v277_v9, 0.0  ;;  %v309_v11 = vmul.f32 0.2, %v277_v9 }
  0xbc   :  { %354 = vst.msk [vmem:[%s619_s3 + $0x2c] sm:$0xf] %vm342_vm4, %v337_v10 }
  0xbd   :  { %v325_v12 = vsel %vm293_vm2, %v277_v9, %v309_v11 }
  0xbe   :  { %v341_v13 = vpack.c.bf16 %v325_v12, %v325_v12 }
  0xc0   :  { %358 = vst.msk [vmem:[%s619_s3 + $0x3c] sm:$0xf] %vm342_vm4, %v341_v13 }

// kernel: discriminator_forward.6
= control target key start
LH: loop header
LB: loop body
LE: loop exit
PB: predicated region body
PF: predicated region fallthrough
CT: control target
= control target key end

     0   :  { %s1562_s1 = inlined_call_operand.vmem [shape: bf16[1024,128], index: 1, kind: input, shape index: {}]   ;;  %s1563_s0 = inlined_call_operand.vmem [shape: bf16[32,1024], index: 0, kind: input, shape index: {}]   ;;  %s1564_s2 = inlined_call_operand.vmem [shape: f32[1,128], index: 2, kind: input, shape index: {}]   ;;  %s1565_s3 = inlined_call_operand.vmem [shape: bf16[32,128], index: 3, kind: output, shape index: {}]  }
   0x1   :  { %v1176_v0 = vld [vmem:[%s1562_s1 + $0x38] sm:$0xff]  ;;  %v1175_v4 = vld [vmem:[%s1562_s1 + $0x30] sm:$0xff]  ;;  %v1174_v8 = vld [vmem:[%s1562_s1 + $0x28] sm:$0xff] }
   0x2   :  { %v1184_v1 = vld [vmem:[%s1562_s1 + $0x78] sm:$0xff]  ;;  %634 = vmatpush.bf16.msra.mxu0 %v1176_v0  ;;  %v1183_v5 = vld [vmem:[%s1562_s1 + $0x70] sm:$0xff]  ;;  %v1182_v9 = vld [vmem:[%s1562_s1 + $0x68] sm:$0xff] }
   0x3   :  { %v1192_v2 = vld [vmem:[%s1562_s1 + $0xb8] sm:$0xff]  ;;  %653 = vmatpush.bf16.msra.mxu1 %v1184_v1  ;;  %v1191_v6 = vld [vmem:[%s1562_s1 + $0xb0] sm:$0xff]  ;;  %v1190_v10 = vld [vmem:[%s1562_s1 + $0xa8] sm:$0xff] }
   0x4   :  { %v1200_v3 = vld [vmem:[%s1562_s1 + $0xf8] sm:$0xff]  ;;  %672 = vmatpush.bf16.msra.mxu2 %v1192_v2  ;;  %v1199_v7 = vld [vmem:[%s1562_s1 + $0xf0] sm:$0xff]  ;;  %v1198_v11 = vld [vmem:[%s1562_s1 + $0xe8] sm:$0xff] }
   0x5   :  { %691 = vmatpush.bf16.msra.mxu3 %v1200_v3  ;;  %v1173_v12 = vld [vmem:[%s1562_s1 + $0x20] sm:$0xff]  ;;  %v1172_v16 = vld [vmem:[%s1562_s1 + $0x18] sm:$0xff]  ;;  %v1171_v20 = vld [vmem:[%s1562_s1 + $0x10] sm:$0xff] }
   0x6   :  { %635 = vmatpush.bf16.msra.mxu0 %v1175_v4  ;;  %v1181_v13 = vld [vmem:[%s1562_s1 + $0x60] sm:$0xff]  ;;  %v1180_v17 = vld [vmem:[%s1562_s1 + $0x58] sm:$0xff]  ;;  %v1179_v21 = vld [vmem:[%s1562_s1 + $0x50] sm:$0xff] }
   0x7   :  { %654 = vmatpush.bf16.msra.mxu1 %v1183_v5  ;;  %v1189_v14 = vld [vmem:[%s1562_s1 + $0xa0] sm:$0xff]  ;;  %v1188_v18 = vld [vmem:[%s1562_s1 + $0x98] sm:$0xff]  ;;  %v1187_v22 = vld [vmem:[%s1562_s1 + $0x90] sm:$0xff] }
   0x8   :  { %673 = vmatpush.bf16.msra.mxu2 %v1191_v6  ;;  %v1197_v15 = vld [vmem:[%s1562_s1 + $0xe0] sm:$0xff]  ;;  %v1196_v19 = vld [vmem:[%s1562_s1 + $0xd8] sm:$0xff]  ;;  %v1195_v23 = vld [vmem:[%s1562_s1 + $0xd0] sm:$0xff] }
   0x9   :  { %692 = vmatpush.bf16.msra.mxu3 %v1199_v7  ;;  %v1170_v24 = vld [vmem:[%s1562_s1 + $0x8] sm:$0xff]  ;;  %v1169_v28 = vld [vmem:[%s1562_s1] sm:$0xff]  ;;  %v1224_v40 = vld [vmem:[%s1562_s1 + $0x1b8] sm:$0xff] }
   0xa   :  { %636 = vmatpush.bf16.msra.mxu0 %v1174_v8  ;;  %v1178_v25 = vld [vmem:[%s1562_s1 + $0x48] sm:$0xff]  ;;  %v1177_v29 = vld [vmem:[%s1562_s1 + $0x40] sm:$0xff]  ;;  %v1208_v41 = vld [vmem:[%s1562_s1 + $0x138] sm:$0xff] }
   0xb   :  { %655 = vmatpush.bf16.msra.mxu1 %v1182_v9  ;;  %v1186_v26 = vld [vmem:[%s1562_s1 + $0x88] sm:$0xff]  ;;  %v1185_v30 = vld [vmem:[%s1562_s1 + $0x80] sm:$0xff]  ;;  %v1216_v46 = vld [vmem:[%s1562_s1 + $0x178] sm:$0xff] }
   0xc   :  { %674 = vmatpush.bf16.msra.mxu2 %v1190_v10  ;;  %v1194_v27 = vld [vmem:[%s1562_s1 + $0xc8] sm:$0xff]  ;;  %v1193_v31 = vld [vmem:[%s1562_s1 + $0xc0] sm:$0xff]  ;;  %v1232_v47 = vld [vmem:[%s1562_s1 + $0x1f8] sm:$0xff] }
   0xd   :  { %693 = vmatpush.bf16.msra.mxu3 %v1198_v11  ;;  %v835_v32 = vld [vmem:[%s1563_s0] sm:$0xf]  ;;  %v1153_v34 = vld [vmem:[%s1563_s0 + $0x4] sm:$0xf]  ;;  %v843_v36 = vld [vmem:[%s1563_s0 + $0x8] sm:$0xf] }
   0xe   :  { %637 = vmatpush.bf16.msra.mxu0 %v1173_v12  ;;  %v1157_v33 = vld [vmem:[%s1563_s0 + $0x1c] sm:$0xf0]  ;;  %v837_v35 = vld [vmem:[%s1563_s0 + $0x20] sm:$0xf0]  ;;  %v1158_v37 = vld [vmem:[%s1563_s0 + $0x24] sm:$0xf0] }
   0xf   :  { %656 = vmatpush.bf16.msra.mxu1 %v1181_v13  ;;  %v1154_v38 = vld [vmem:[%s1563_s0 + $0xc] sm:$0xf]  ;;  %v836_v42 = vor.u32 %v1157_v33, %v835_v32  ;;  %v840_v43 = vor.u32 %v1153_v34, %v837_v35  ;;  %v844_v44 = vor.u32 %v1158_v37, %v843_v36  ;;  %v1223_v48 = vld [vmem:[%s1562_s1 + $0x1b0] sm:$0xff]  ;;  %v1221_v56 = vld [vmem:[%s1562_s1 + $0x1a0] sm:$0xff] }
  0x10   :  { %675 = vmatpush.bf16.msra.mxu2 %v1189_v14  ;;  %v845_v39 = vld [vmem:[%s1563_s0 + $0x28] sm:$0xf0]  ;;  %v1207_v49 = vld [vmem:[%s1562_s1 + $0x130] sm:$0xff]  ;;  %v1205_v57 = vld [vmem:[%s1562_s1 + $0x120] sm:$0xff] }
  0x11   :  { %694 = vmatpush.bf16.msra.mxu3 %v1197_v15  ;;  %v848_v45 = vor.u32 %v1154_v38, %v845_v39  ;;  %v1215_v50 = vld [vmem:[%s1562_s1 + $0x170] sm:$0xff]  ;;  %v1222_v52 = vld [vmem:[%s1562_s1 + $0x1a8] sm:$0xff]  ;;  %v1213_v58 = vld [vmem:[%s1562_s1 + $0x160] sm:$0xff] }
  0x12   :  { %638 = vmatpush.bf16.msra.mxu0 %v1172_v16  ;;  %v1231_v51 = vld [vmem:[%s1562_s1 + $0x1f0] sm:$0xff]  ;;  %v1206_v53 = vld [vmem:[%s1562_s1 + $0x128] sm:$0xff]  ;;  %v1229_v59 = vld [vmem:[%s1562_s1 + $0x1e0] sm:$0xff] }
  0x13   :  { %657 = vmatpush.bf16.msra.mxu1 %v1180_v17  ;;  %v1214_v54 = vld [vmem:[%s1562_s1 + $0x168] sm:$0xff]  ;;  %v867_v60 = vld [vmem:[%s1563_s0 + $0x40] sm:$0xf]  ;;  %v1161_v62 = vld [vmem:[%s1563_s0 + $0x44] sm:$0xf] }
  0x14   :  { %676 = vmatpush.bf16.msra.mxu2 %v1188_v18  ;;  %v1230_v55 = vld [vmem:[%s1562_s1 + $0x1e8] sm:$0xff]  ;;  %v1165_v61 = vld [vmem:[%s1563_s0 + $0x5c] sm:$0xf0]  ;;  %v869_v63 = vld [vmem:[%s1563_s0 + $0x60] sm:$0xf0] }
  0x15   :  { %695 = vmatpush.bf16.msra.mxu3 %v1196_v19  ;;  %v875_v0 = vld [vmem:[%s1563_s0 + $0x48] sm:$0xf]  ;;  %v1162_v2 = vld [vmem:[%s1563_s0 + $0x4c] sm:$0xf]  ;;  %v1220_v4 = vld [vmem:[%s1562_s1 + $0x198] sm:$0xff]  ;;  %v868_v6 = vor.u32 %v1165_v61, %v867_v60  ;;  %v872_v7 = vor.u32 %v1161_v62, %v869_v63 }
  0x16   :  { %639 = vmatpush.bf16.msra.mxu0 %v1171_v20  ;;  %v1166_v1 = vld [vmem:[%s1563_s0 + $0x64] sm:$0xf0]  ;;  %v877_v3 = vld [vmem:[%s1563_s0 + $0x68] sm:$0xf0]  ;;  %v1204_v5 = vld [vmem:[%s1562_s1 + $0x118] sm:$0xff] }
  0x17   :  { %658 = vmatpush.bf16.msra.mxu1 %v1179_v21  ;;  %v876_v8 = vor.u32 %v1166_v1, %v875_v0  ;;  %v880_v9 = vor.u32 %v1162_v2, %v877_v3  ;;  %v1212_v10 = vld [vmem:[%s1562_s1 + $0x158] sm:$0xff]  ;;  %v1219_v12 = vld [vmem:[%s1562_s1 + $0x190] sm:$0xff]  ;;  %v1218_v16 = vld [vmem:[%s1562_s1 + $0x188] sm:$0xff] }
  0x18   :  { %677 = vmatpush.bf16.msra.mxu2 %v1187_v22  ;;  %v1228_v11 = vld [vmem:[%s1562_s1 + $0x1d8] sm:$0xff]  ;;  %v1203_v13 = vld [vmem:[%s1562_s1 + $0x110] sm:$0xff]  ;;  %v1202_v17 = vld [vmem:[%s1562_s1 + $0x108] sm:$0xff] }
  0x19   :  { %696 = vmatpush.bf16.msra.mxu3 %v1195_v23  ;;  %v1211_v14 = vld [vmem:[%s1562_s1 + $0x150] sm:$0xff]  ;;  %v1210_v18 = vld [vmem:[%s1562_s1 + $0x148] sm:$0xff]  ;;  %v1217_v20 = vld [vmem:[%s1562_s1 + $0x180] sm:$0xff] }
  0x1a   :  { %640 = vmatpush.bf16.msra.mxu0 %v1170_v24  ;;  %v1227_v15 = vld [vmem:[%s1562_s1 + $0x1d0] sm:$0xff]  ;;  %v1226_v19 = vld [vmem:[%s1562_s1 + $0x1c8] sm:$0xff]  ;;  %v1201_v21 = vld [vmem:[%s1562_s1 + $0x100] sm:$0xff] }
  0x1b   :  { %659 = vmatpush.bf16.msra.mxu1 %v1178_v25  ;;  %v1209_v22 = vld [vmem:[%s1562_s1 + $0x140] sm:$0xff]  ;;  %v851_v24 = vld [vmem:[%s1563_s0 + $0x10] sm:$0xf]  ;;  %v1163_v38 = vld [vmem:[%s1563_s0 + $0x54] sm:$0xf] }
  0x1c   :  { %678 = vmatpush.bf16.msra.mxu2 %v1186_v26  ;;  %v1225_v23 = vld [vmem:[%s1562_s1 + $0x1c0] sm:$0xff]  ;;  %v1159_v25 = vld [vmem:[%s1563_s0 + $0x2c] sm:$0xf0]  ;;  %v1155_v26 = vld [vmem:[%s1563_s0 + $0x14] sm:$0xf] }
  0x1d   :  { %697 = vmatpush.bf16.msra.mxu3 %v1194_v27  ;;  %v853_v27 = vld [vmem:[%s1563_s0 + $0x30] sm:$0xf0]  ;;  %v852_v32 = vor.u32 %v1159_v25, %v851_v24  ;;  %v883_v36 = vld [vmem:[%s1563_s0 + $0x50] sm:$0xf] }
  0x1e   :  { %641 = vmatpush.bf16.msra.mxu0 %v1169_v28  ;;  %v859_v28 = vld [vmem:[%s1563_s0 + $0x18] sm:$0xf]  ;;  %v856_v33 = vor.u32 %v1155_v26, %v853_v27  ;;  %v1167_v37 = vld [vmem:[%s1563_s0 + $0x6c] sm:$0xf0]  ;;  %v885_v39 = vld [vmem:[%s1563_s0 + $0x70] sm:$0xf0] }
  0x1f   :  { %660 = vmatpush.bf16.msra.mxu1 %v1177_v29  ;;  %v1160_v29 = vld [vmem:[%s1563_s0 + $0x34] sm:$0xf0] }
  0x20   :  { %679 = vmatpush.bf16.msra.mxu2 %v1185_v30  ;;  %v1156_v30 = vld [vmem:[%s1563_s0 + $0x1c] sm:$0xf]  ;;  %v860_v34 = vor.u32 %v1160_v29, %v859_v28 }
  0x21   :  { %698 = vmatpush.bf16.msra.mxu3 %v1193_v31  ;;  %642 = vmatmul.bf16.vlgmr.msra.gmra.mxu0 %v836_v42  ;;  %v861_v31 = vld [vmem:[%s1563_s0 + $0x38] sm:$0xf0] }
  0x22   :  { %710 = vmatpush.bf16.msrb.mxu0 %v1208_v41  ;;  %661 = vmatmul.bf16.vlgmr.msra.gmra.mxu1 %v840_v43  ;;  %v864_v35 = vor.u32 %v1156_v30, %v861_v31  ;;  %v1168_v41 = vld [vmem:[%s1563_s0 + $0x74] sm:$0xf0]  ;;  %v1164_v42 = vld [vmem:[%s1563_s0 + $0x5c] sm:$0xf] }
  0x23   :  { %680 = vmatmul.bf16.vlgmr.msra.gmra.mxu2 %v844_v44  ;;  %729 = vmatpush.bf16.msrb.mxu1 %v1216_v46  ;;  %v893_v43 = vld [vmem:[%s1563_s0 + $0x78] sm:$0xf0]  ;;  %v884_v44 = vor.u32 %v1167_v37, %v883_v36 }
  0x24   :  { %748 = vmatpush.bf16.msrb.mxu2 %v1224_v40  ;;  %699 = vmatmul.bf16.vlgmr.msra.gmra.mxu3 %v848_v45  ;;  %v891_v40 = vld [vmem:[%s1563_s0 + $0x58] sm:$0xf]  ;;  %v888_v45 = vor.u32 %v1163_v38, %v885_v39 }
  0x25   :  { %767 = vmatpush.bf16.msrb.mxu3 %v1232_v47  ;;  %v892_v46 = vor.u32 %v1168_v41, %v891_v40  ;;  %v896_v47 = vor.u32 %v1164_v42, %v893_v43 }
  0x26   :  { %711 = vmatpush.bf16.msrb.mxu0 %v1207_v49 }
  0x27   :  { %730 = vmatpush.bf16.msrb.mxu1 %v1215_v50 }
  0x28   :  { %749 = vmatpush.bf16.msrb.mxu2 %v1223_v48 }
  0x29   :  { %768 = vmatpush.bf16.msrb.mxu3 %v1231_v51 }
  0x2a   :  { %712 = vmatpush.bf16.msrb.mxu0 %v1206_v53 }
  0x2b   :  { %731 = vmatpush.bf16.msrb.mxu1 %v1214_v54 }
  0x2c   :  { %750 = vmatpush.bf16.msrb.mxu2 %v1222_v52 }
  0x2d   :  { %769 = vmatpush.bf16.msrb.mxu3 %v1230_v55 }
  0x2e   :  { %713 = vmatpush.bf16.msrb.mxu0 %v1205_v57 }
  0x2f   :  { %732 = vmatpush.bf16.msrb.mxu1 %v1213_v58 }
  0x30   :  { %751 = vmatpush.bf16.msrb.mxu2 %v1221_v56 }
  0x31   :  { %770 = vmatpush.bf16.msrb.mxu3 %v1229_v59  ;;  %647 = vmatmul.bf16.gmra.mxu0 %v868_v6 }
  0x32   :  { %714 = vmatpush.bf16.msrb.mxu0 %v1204_v5  ;;  %666 = vmatmul.bf16.gmra.mxu1 %v872_v7 }
  0x33   :  { %685 = vmatmul.bf16.gmra.mxu2 %v876_v8  ;;  %733 = vmatpush.bf16.msrb.mxu1 %v1212_v10 }
  0x34   :  { %752 = vmatpush.bf16.msrb.mxu2 %v1220_v4  ;;  %704 = vmatmul.bf16.gmra.mxu3 %v880_v9 }
  0x35   :  { %771 = vmatpush.bf16.msrb.mxu3 %v1228_v11 }
  0x36   :  { %715 = vmatpush.bf16.msrb.mxu0 %v1203_v13 }
  0x37   :  { %734 = vmatpush.bf16.msrb.mxu1 %v1211_v14 }
  0x38   :  { %753 = vmatpush.bf16.msrb.mxu2 %v1219_v12 }
  0x39   :  { %772 = vmatpush.bf16.msrb.mxu3 %v1227_v15 }
  0x3a   :  { %716 = vmatpush.bf16.msrb.mxu0 %v1202_v17 }
  0x3b   :  { %735 = vmatpush.bf16.msrb.mxu1 %v1210_v18 }
  0x3c   :  { %754 = vmatpush.bf16.msrb.mxu2 %v1218_v16 }
  0x3d   :  { %773 = vmatpush.bf16.msrb.mxu3 %v1226_v19  ;;  %v1244_v19 = vld [vmem:[%s1564_s2] ss:$0 sm:$0xff] }
  0x3e   :  { %717 = vmatpush.bf16.msrb.mxu0 %v1201_v21 }
  0x3f   :  { %736 = vmatpush.bf16.msrb.mxu1 %v1209_v22 }
  0x40   :  { %755 = vmatpush.bf16.msrb.mxu2 %v1217_v20 }
  0x41   :  { %774 = vmatpush.bf16.msrb.mxu3 %v1225_v23  ;;  %718 = vmatmul.bf16.vlgmr.msrb.gmra.mxu0 %v852_v32 }
  0x42   :  { %737 = vmatmul.bf16.vlgmr.msrb.gmra.mxu1 %v856_v33 }
  0x43   :  { %756 = vmatmul.bf16.vlgmr.msrb.gmra.mxu2 %v860_v34 }
  0x44   :  { %775 = vmatmul.bf16.vlgmr.msrb.gmra.mxu3 %v864_v35 }
  0x51   :  { %723 = vmatmul.bf16.gmra.mxu0 %v884_v44 }
  0x52   :  { %742 = vmatmul.bf16.gmra.mxu1 %v888_v45 }
  0x53   :  { %761 = vmatmul.bf16.gmra.mxu2 %v892_v46 }
  0x54   :  { %780 = vmatmul.bf16.gmra.mxu3 %v896_v47 }
  0x9e   :  { %v643_v48 = vpop.f32.mrf.mxu0 }
  0x9f   :  { %v662_v49 = vpop.f32.mrf.mxu1 }
  0xa0   :  { %v663_v62 = vadd.f32 %v662_v49, %v643_v48 }
  0xa6   :  { %v681_v50 = vpop.f32.mrf.mxu2  ;;  %v645_v52 = vpop.f32.mrf.mxu0 }
  0xa7   :  { %v700_v51 = vpop.f32.mrf.mxu3  ;;  %v664_v53 = vpop.f32.mrf.mxu1  ;;  %v682_v63 = vadd.f32 %v681_v50, %v663_v62 }
  0xa8   :  { %v665_v5 = vadd.f32 %v664_v53, %v645_v52 }
  0xa9   :  { %v701_v2 = vadd.f32 %v700_v51, %v682_v63 }
  0xae   :  { %v683_v54 = vpop.f32.mrf.mxu2  ;;  %v648_v56 = vpop.f32.mrf.mxu0 }
  0xaf   :  { %v702_v55 = vpop.f32.mrf.mxu3  ;;  %v667_v57 = vpop.f32.mrf.mxu1  ;;  %v684_v7 = vadd.f32 %v683_v54, %v665_v5 }
  0xb0   :  { %v668_v15 = vadd.f32 %v667_v57, %v648_v56 }
  0xb1   :  { %v703_v10 = vadd.f32 %v702_v55, %v684_v7 }
  0xb6   :  { %v686_v58 = vpop.f32.mrf.mxu2  ;;  %v650_v60 = vpop.f32.mrf.mxu0 }
  0xb7   :  { %v705_v59 = vpop.f32.mrf.mxu3  ;;  %v669_v61 = vpop.f32.mrf.mxu1  ;;  %v687_v17 = vadd.f32 %v686_v58, %v668_v15 }
  0xb8   :  { %v670_v27 = vadd.f32 %v669_v61, %v650_v60 }
  0xb9   :  { %v706_v22 = vadd.f32 %v705_v59, %v687_v17 }
  0xbe   :  { %v688_v0 = vpop.f32.mrf.mxu2  ;;  %v719_v3 = vpop.f32.mrf.mxu0 }
  0xbf   :  { %v707_v1 = vpop.f32.mrf.mxu3  ;;  %v738_v4 = vpop.f32.mrf.mxu1  ;;  %v720_v6 = vadd.f32 %v719_v3, %v701_v2  ;;  %v689_v31 = vadd.f32 %v688_v0, %v670_v27 }
  0xc1   :  { %v739_v8 = vadd.f32 %v738_v4, %v720_v6  ;;  %v708_v37 = vadd.f32 %v707_v1, %v689_v31 }
  0xc6   :  { %v757_v9 = vpop.f32.mrf.mxu2  ;;  %v721_v13 = vpop.f32.mrf.mxu0 }
  0xc7   :  { %v758_v11 = vadd.f32 %v757_v9, %v739_v8  ;;  %v776_v12 = vpop.f32.mrf.mxu3  ;;  %v740_v14 = vpop.f32.mrf.mxu1  ;;  %v722_v16 = vadd.f32 %v721_v13, %v703_v10 }
  0xc9   :  { %v777_v18 = vadd.f32 %v776_v12, %v758_v11  ;;  %v741_v20 = vadd.f32 %v740_v14, %v722_v16 }
  0xcb   :  { %v805_v23 = vadd.f32 %v1244_v19, %v777_v18 }
  0xcd   :  { %v813_v32 = vmul.f32 0.2, %v805_v23  ;;  %vm809_vm0 = vcmp.ge.f32.partialorder %v805_v23, 0.0 }
  0xce   :  { %v759_v21 = vpop.f32.mrf.mxu2  ;;  %v724_v26 = vpop.f32.mrf.mxu0 }
  0xcf   :  { %v760_v24 = vadd.f32 %v759_v21, %v741_v20  ;;  %v778_v25 = vpop.f32.mrf.mxu3  ;;  %v725_v29 = vadd.f32 %v724_v26, %v706_v22  ;;  %v743_v30 = vpop.f32.mrf.mxu1  ;;  %v817_v38 = vsel %vm809_vm0, %v805_v23, %v813_v32 }
  0xd1   :  { %v779_v28 = vadd.f32 %v778_v25, %v760_v24  ;;  %v744_v35 = vadd.f32 %v743_v30, %v725_v29 }
  0xd3   :  { %v806_v33 = vadd.f32 %v1244_v19, %v779_v28 }
  0xd5   :  { %vm810_vm1 = vcmp.ge.f32.partialorder %v806_v33, 0.0  ;;  %v814_v34 = vmul.f32 0.2, %v806_v33 }
  0xd6   :  { %v762_v36 = vpop.f32.mrf.mxu2  ;;  %v726_v42 = vpop.f32.mrf.mxu0 }
  0xd7   :  { %v818_v39 = vsel %vm810_vm1, %v806_v33, %v814_v34  ;;  %v763_v40 = vadd.f32 %v762_v36, %v744_v35  ;;  %v781_v41 = vpop.f32.mrf.mxu3  ;;  %v727_v44 = vadd.f32 %v726_v42, %v708_v37  ;;  %v745_v46 = vpop.f32.mrf.mxu1 }
  0xd8   :  { %v1236_v43 = vpack.c.bf16 %v818_v39, %v817_v38 }
  0xd9   :  { %v782_v45 = vadd.f32 %v781_v41, %v763_v40  ;;  %v746_v47 = vadd.f32 %v745_v46, %v727_v44 }
  0xda   :  { %1237 = vst [vmem:[%s1565_s3] sm:$0xff] %v1236_v43  }
  0xdb   :  { %v807_v49 = vadd.f32 %v1244_v19, %v782_v45 }
  0xdd   :  { %v815_v53 = vmul.f32 0.2, %v807_v49  ;;  %vm811_vm2 = vcmp.ge.f32.partialorder %v807_v49, 0.0 }
  0xde   :  { %v764_v48 = vpop.f32.mrf.mxu2 }
  0xdf   :  { %v765_v50 = vadd.f32 %v764_v48, %v746_v47  ;;  %v783_v51 = vpop.f32.mrf.mxu3  ;;  %v819_v56 = vsel %vm811_vm2, %v807_v49, %v815_v53 }
  0xe1   :  { %v784_v52 = vadd.f32 %v783_v51, %v765_v50 }
  0xe3   :  { %v808_v54 = vadd.f32 %v1244_v19, %v784_v52 }
  0xe5   :  { %vm812_vm3 = vcmp.ge.f32.partialorder %v808_v54, 0.0  ;;  %v816_v55 = vmul.f32 0.2, %v808_v54 }
  0xe7   :  { %v820_v57 = vsel %vm812_vm3, %v808_v54, %v816_v55 }
  0xe8   :  { %v1241_v58 = vpack.c.bf16 %v820_v57, %v819_v56 }
  0xea   :  { %1243 = vst [vmem:[%s1565_s3 + $0x8] sm:$0xff] %v1241_v58  }

// kernel: discriminator_forward.7
= control target key start
LH: loop header
LB: loop body
LE: loop exit
PB: predicated region body
PF: predicated region fallthrough
CT: control target
= control target key end

     0   :  { %vm19_vm0 = vcmask 261120   ;;  %v346_v50 = vmov 0.0   ;;  %s508_s1 = inlined_call_operand.vmem [shape: bf16[128,160], index: 1, kind: input, shape index: {}]   ;;  %s509_s0 = inlined_call_operand.vmem [shape: bf16[32,128], index: 0, kind: input, shape index: {}]   ;;  %s510_s2 = inlined_call_operand.vmem [shape: f32[1,160], index: 2, kind: input, shape index: {}]   ;;  %s511_s3 = inlined_call_operand.vmem [shape: f32[32,160], index: 3, kind: output, shape index: {}]  }
   0x1   :  { %v305_v0 = vld [vmem:[%s508_s1 + $0x70] sm:$0xf]  ;;  %v328_v1 = vld [vmem:[%s508_s1 + $0x74] sm:$0xf0]  ;;  %v327_v2 = vld [vmem:[%s508_s1 + $0x74] sm:$0xf] }
   0x2   :  { %v306_v3 = vor.u32 %v328_v1, %v305_v0  ;;  %v307_v4 = vld [vmem:[%s508_s1 + $0x78] sm:$0xf0]  ;;  %v297_v5 = vld [vmem:[%s508_s1 + $0x60] sm:$0xf]  ;;  %v326_v6 = vld [vmem:[%s508_s1 + $0x64] sm:$0xf0] }
   0x3   :  { %v310_v7 = vor.u32 %v327_v2, %v307_v4  ;;  %v325_v8 = vld [vmem:[%s508_s1 + $0x64] sm:$0xf]  ;;  %v299_v9 = vld [vmem:[%s508_s1 + $0x68] sm:$0xf0]  ;;  %v298_v10 = vor.u32 %v326_v6, %v297_v5  ;;  %v289_v12 = vld [vmem:[%s508_s1 + $0x50] sm:$0xf] }
   0x4   :  { %147 = vmatpush.bf16.msra.mxu0 %v306_v3  ;;  %329 = vmatpush.bf16.msra.mxu2 %v306_v3  ;;  %v302_v11 = vor.u32 %v325_v8, %v299_v9  ;;  %v324_v13 = vld [vmem:[%s508_s1 + $0x54] sm:$0xf0]  ;;  %v323_v14 = vld [vmem:[%s508_s1 + $0x54] sm:$0xf]  ;;  %v291_v15 = vld [vmem:[%s508_s1 + $0x58] sm:$0xf0] }
   0x5   :  { %166 = vmatpush.bf16.msra.mxu1 %v310_v7  ;;  %337 = vmatpush.bf16.msra.mxu3 %v310_v7  ;;  %v290_v16 = vor.u32 %v324_v13, %v289_v12  ;;  %v294_v17 = vor.u32 %v323_v14, %v291_v15  ;;  %v281_v18 = vld [vmem:[%s508_s1 + $0x40] sm:$0xf]  ;;  %v322_v19 = vld [vmem:[%s508_s1 + $0x44] sm:$0xf0]  ;;  %v321_v20 = vld [vmem:[%s508_s1 + $0x44] sm:$0xf] }
   0x6   :  { %v283_v21 = vld [vmem:[%s508_s1 + $0x48] sm:$0xf0]  ;;  %v282_v22 = vor.u32 %v322_v19, %v281_v18  ;;  %v273_v24 = vld [vmem:[%s508_s1 + $0x30] sm:$0xf]  ;;  %v320_v25 = vld [vmem:[%s508_s1 + $0x34] sm:$0xf0] }
   0x7   :  { %v286_v23 = vor.u32 %v321_v20, %v283_v21  ;;  %v319_v26 = vld [vmem:[%s508_s1 + $0x34] sm:$0xf]  ;;  %v275_v27 = vld [vmem:[%s508_s1 + $0x38] sm:$0xf0]  ;;  %v274_v28 = vor.u32 %v320_v25, %v273_v24  ;;  %v265_v30 = vld [vmem:[%s508_s1 + $0x20] sm:$0xf] }
   0x8   :  { %148 = vmatpush.bf16.msra.mxu0 %v298_v10  ;;  %330 = vmatpush.bf16.msra.mxu2 %v298_v10  ;;  %v278_v29 = vor.u32 %v319_v26, %v275_v27  ;;  %v318_v31 = vld [vmem:[%s508_s1 + $0x24] sm:$0xf0]  ;;  %v317_v32 = vld [vmem:[%s508_s1 + $0x24] sm:$0xf]  ;;  %v267_v33 = vld [vmem:[%s508_s1 + $0x28] sm:$0xf0] }
   0x9   :  { %167 = vmatpush.bf16.msra.mxu1 %v302_v11  ;;  %338 = vmatpush.bf16.msra.mxu3 %v302_v11  ;;  %v266_v34 = vor.u32 %v318_v31, %v265_v30  ;;  %v270_v35 = vor.u32 %v317_v32, %v267_v33  ;;  %v257_v36 = vld [vmem:[%s508_s1 + $0x10] sm:$0xf]  ;;  %v316_v37 = vld [vmem:[%s508_s1 + $0x14] sm:$0xf0]  ;;  %v315_v38 = vld [vmem:[%s508_s1 + $0x14] sm:$0xf] }
   0xa   :  { %v259_v39 = vld [vmem:[%s508_s1 + $0x18] sm:$0xf0]  ;;  %v258_v40 = vor.u32 %v316_v37, %v257_v36  ;;  %v249_v42 = vld [vmem:[%s508_s1] sm:$0xf]  ;;  %v314_v43 = vld [vmem:[%s508_s1 + $0x4] sm:$0xf0] }
   0xb   :  { %v262_v41 = vor.u32 %v315_v38, %v259_v39  ;;  %v313_v44 = vld [vmem:[%s508_s1 + $0x4] sm:$0xf]  ;;  %v251_v45 = vld [vmem:[%s508_s1 + $0x8] sm:$0xf0]  ;;  %v250_v46 = vor.u32 %v314_v43, %v249_v42  ;;  %20 = vst.msk [vmem:[#allocation2 + $0x8] sm:$0xff] %vm19_vm0, %v346_v50 }
   0xc   :  { %149 = vmatpush.bf16.msra.mxu0 %v290_v16  ;;  %331 = vmatpush.bf16.msra.mxu2 %v290_v16  ;;  %v254_v47 = vor.u32 %v313_v44, %v251_v45  ;;  %v312_v48 = vld [vmem:[%s509_s0 + $0x8] sm:$0xff]  ;;  %v311_v49 = vld [vmem:[%s509_s0] sm:$0xff]  ;;  %22 = vst.msk [vmem:[#allocation2 + $0x18] sm:$0xff] %vm19_vm0, %v346_v50 }
   0xd   :  { %168 = vmatpush.bf16.msra.mxu1 %v294_v17  ;;  %339 = vmatpush.bf16.msra.mxu3 %v294_v17  ;;  %24 = vst.msk [vmem:[#allocation2 + $0x28] sm:$0xff] %vm19_vm0, %v346_v50  ;;  %v213_v51 = vld [vmem:[%s510_s2] sm:$0x3] }
   0xe   :  { %26 = vst.msk [vmem:[#allocation2 + $0x38] sm:$0xff] %vm19_vm0, %v346_v50  ;;  %v215_v52 = vperm.slane %v213_v51, 0  ;;  %v216_v61 = vperm.slane %v213_v51, 1 }
  0x10   :  { %150 = vmatpush.bf16.msra.mxu0 %v282_v22  ;;  %332 = vmatpush.bf16.msra.mxu2 %v282_v22 }
  0x11   :  { %169 = vmatpush.bf16.msra.mxu1 %v286_v23  ;;  %340 = vmatpush.bf16.msra.mxu3 %v286_v23 }
  0x12   :  { %v28_v53 = vld [vmem:[#allocation2 + $0x8] sm:$0xff] }
  0x13   :  { %v30_v0 = vld [vmem:[#allocation2 + $0x18] sm:$0xff] }
  0x14   :  { %151 = vmatpush.bf16.msra.mxu0 %v274_v28  ;;  %333 = vmatpush.bf16.msra.mxu2 %v274_v28  ;;  %v32_v58 = vld [vmem:[#allocation2 + $0x28] sm:$0xff] }
  0x15   :  { %170 = vmatpush.bf16.msra.mxu1 %v278_v29  ;;  %341 = vmatpush.bf16.msra.mxu3 %v278_v29  ;;  %v34_v7 = vld [vmem:[#allocation2 + $0x38] sm:$0xff] }
  0x18   :  { %152 = vmatpush.bf16.msra.mxu0 %v266_v34  ;;  %334 = vmatpush.bf16.msra.mxu2 %v266_v34 }
  0x19   :  { %171 = vmatpush.bf16.msra.mxu1 %v270_v35  ;;  %342 = vmatpush.bf16.msra.mxu3 %v270_v35 }
  0x1c   :  { %153 = vmatpush.bf16.msra.mxu0 %v258_v40  ;;  %335 = vmatpush.bf16.msra.mxu2 %v258_v40 }
  0x1d   :  { %172 = vmatpush.bf16.msra.mxu1 %v262_v41  ;;  %343 = vmatpush.bf16.msra.mxu3 %v262_v41 }
  0x20   :  { %154 = vmatpush.bf16.msra.mxu0 %v250_v46  ;;  %336 = vmatpush.bf16.msra.mxu2 %v250_v46 }
  0x21   :  { %173 = vmatpush.bf16.msra.mxu1 %v254_v47  ;;  %344 = vmatpush.bf16.msra.mxu3 %v254_v47 }
  0x23   :  { %155 = vmatmul.bf16.vlgmr.msra.gmra.mxu0 %v311_v49  ;;  %160 = vmatmul.bf16.vlgmr.msra.gmra.mxu2 %v312_v48 }
  0x24   :  { %174 = vmatmul.bf16.vlgmr.msra.gmra.mxu1 %v311_v49  ;;  %179 = vmatmul.bf16.vlgmr.msra.gmra.mxu3 %v312_v48 }
  0xa0   :  { %v156_v54 = vpop.f32.mrf.mxu0 }
  0xa1   :  { %v175_v55 = vpop.f32.mrf.mxu1  ;;  %v219_v57 = vadd.f32 %v215_v52, %v156_v54 }
  0xa2   :  { %v186_v56 = vadd.f32 %v175_v55, %v28_v53 }
  0xa3   :  { %227 = vst [vmem:[%s511_s3] sm:$0xff] %v219_v57 }
  0xa4   :  { %195 = vst.msk [vmem:[#allocation2 + $0x8] sm:$0xff] %vm19_vm0, %v186_v56 }
  0xa6   :  { %v161_v59 = vpop.f32.mrf.mxu2 }
  0xa7   :  { %v180_v60 = vpop.f32.mrf.mxu3  ;;  %v223_v1 = vadd.f32 %v215_v52, %v161_v59 }
  0xa8   :  { %v190_v62 = vadd.f32 %v180_v60, %v32_v58  ;;  %v158_v63 = vpop.f32.mrf.mxu0 }
  0xa9   :  { %v177_v2 = vpop.f32.mrf.mxu1  ;;  %231 = vst [vmem:[%s511_s3 + $0x20] sm:$0xff] %v223_v1  ;;  %v221_v4 = vadd.f32 %v215_v52, %v158_v63 }
  0xaa   :  { %199 = vst.msk [vmem:[#allocation2 + $0x28] sm:$0xff] %vm19_vm0, %v190_v62  ;;  %v188_v5 = vadd.f32 %v177_v2, %v30_v0 }
  0xab   :  { %v206_v3 = vld [vmem:[#allocation2 + $0x8] sm:$0xff]  ;;  %229 = vst [vmem:[%s511_s3 + $0x10] sm:$0xff] %v221_v4 }
  0xac   :  { %v220_v6 = vadd.f32 %v216_v61, %v206_v3  ;;  %197 = vst.msk [vmem:[#allocation2 + $0x18] sm:$0xff] %vm19_vm0, %v188_v5 }
  0xae   :  { %228 = vst.msk [vmem:[%s511_s3 + $0x8] sm:$0xff] %vm19_vm0, %v220_v6  ;;  %v163_v8 = vpop.f32.mrf.mxu2 }
  0xaf   :  { %v182_v9 = vpop.f32.mrf.mxu3  ;;  %v225_v12 = vadd.f32 %v215_v52, %v163_v8 }
  0xb0   :  { %v192_v10 = vadd.f32 %v182_v9, %v34_v7 }
  0xb1   :  { %v210_v11 = vld [vmem:[#allocation2 + $0x28] sm:$0xff]  ;;  %233 = vst [vmem:[%s511_s3 + $0x30] sm:$0xff] %v225_v12 }
  0xb2   :  { %v224_v13 = vadd.f32 %v216_v61, %v210_v11  ;;  %201 = vst.msk [vmem:[#allocation2 + $0x38] sm:$0xff] %vm19_vm0, %v192_v10 }
  0xb3   :  { %v208_v14 = vld [vmem:[#allocation2 + $0x18] sm:$0xff] }
  0xb4   :  { %232 = vst.msk [vmem:[%s511_s3 + $0x28] sm:$0xff] %vm19_vm0, %v224_v13  ;;  %v222_v15 = vadd.f32 %v216_v61, %v208_v14 }
  0xb6   :  { %230 = vst.msk [vmem:[%s511_s3 + $0x18] sm:$0xff] %vm19_vm0, %v222_v15 }
  0xb9   :  { %v212_v16 = vld [vmem:[#allocation2 + $0x38] sm:$0xff] }
  0xba   :  { %v226_v17 = vadd.f32 %v216_v61, %v212_v16 }
  0xbc   :  { %234 = vst.msk [vmem:[%s511_s3 + $0x38] sm:$0xff] %vm19_vm0, %v226_v17 }

// kernel: discriminator_forward.8
= control target key start
LH: loop header
LB: loop body
LE: loop exit
PB: predicated region body
PF: predicated region fallthrough
CT: control target
= control target key end

     0   :  { %s821_s20 = smov 0   ;;  %s823_s21 = smov 0   ;;  %s887_s0 = inlined_call_operand.<no memory space> [shape: f32[1,1], index: 0, kind: input, shape index: {}]   ;;  %s888_s1 = inlined_call_operand.vmem [shape: f32[2,16,16], index: 1, kind: input, shape index: {}]   ;;  %s889_s2 = inlined_call_operand.vmem [shape: f32[2,16,16], index: 2, kind: input, shape index: {}]   ;;  %s890_s3 = inlined_call_operand.vmem [shape: f32[2,16,128], index: 3, kind: input, shape index: {}]   ;;  %s891_s4 = inlined_call_operand.vmem [shape: bf16[2,16,128], index: 4, kind: input, shape index: {}]   ;;  %s892_s5 = inlined_call_operand.vmem [shape: bf16[2,16,128], index: 5, kind: output, shape index: {}]  }
   0x1   :  { %10 = sst [smem:[#allocation5]] %s887_s0  ;;  %s825_s22 = smov 0  }
   0x2 LB: > { %s35_s0 = sadd.s32 1, %s779_s21  ;;  %p690_p0 = scmp.ge.s32.totalorder %s783_s22, 1  ;;  %s783_s22 = sphi %s825_s22, %s16_s22   ;;  %s779_s21 = sphi %s823_s21, %s894_s21   ;;  %s775_s20 = sphi %s821_s20, %s893_s20  }
   0x3   : > { %p37_p1 = scmp.ge.s32.totalorder %s35_s0, 2  ;;  %p267_p2 = scmp.lt.s32.totalorder %s783_s22, 3 }
   0x5   : > { %s896_s0 = smov (%p37_p1, %s35_s0), 0  ;;  %p268_p3 = pnand %p690_p0, %p267_p2 }
   0x6   : > { %p331_p4 = scmp.lt.s32.totalorder (!%p268_p3), %s775_s20, 1  ;;  %s510_s8 = sld [smem:[#allocation5]] (!%p268_p3) }
   0x7   : > { %271 = sbr.rel (%p268_p3) target bundleno = 663 (0x297), region = 40 }
   0xc   : > { %s898_s20 = smov (!%p331_p4, %s775_s20), 1  ;;  %vm401_vm0 = vcmask 130048   ;;  %vm385_vm1 = vcmask 7168   ;;  %v785_v7 = vmov -inf   ;;  %v786_v12 = vmov 0  }
   0xd   : > { %s842_s23 = sshll.u32 %s898_s20, 4  ;;  %386 = vst.msk [vmem:[#allocation2] sm:$0xff] %vm385_vm1, %v785_v7  ;;  %746 = vset.pattern.permute.xlu1 %v786_v12  ;;  %747 = vset.pattern.permute.xlu0 %v786_v12  ;;  %v787_v13 = vmov 0.0   ;;  %s708_s9 = sshll.u32 %s898_s20, 3  ;;  %v529_v61 = vstv %s510_s8 }
   0xe   : > { %s348_s26 = scalar_lea.vmem %s889_s2, %s842_s23  ;;  %s338_s29 = scalar_lea.vmem %s888_s1, %s842_s23  ;;  %387 = vst.msk [vmem:[#allocation2 + $0x8] sm:$0xff] %vm385_vm1, %v785_v7  ;;  %748 = vset.pattern.permute.xlu2 %v786_v12 }
   0xf   : > { %v395_v0 = vld [vmem:[%s348_s26] sm:$0xff]  ;;  %v396_v1 = vld [vmem:[%s348_s26 + $0x8] sm:$0xff]  ;;  %388 = vst.msk [vmem:[#allocation3] sm:$0xff] %vm385_vm1, %v787_v13  ;;  %s358_s7 = scalar_lea.vmem %s890_s3, %s842_s23  ;;  %s368_s12 = scalar_lea.vmem %s891_s4, %s708_s9 }
  0x10   : > { %v397_v2 = vpack.c.bf16 %v396_v1, %v395_v0  ;;  %v392_v4 = vld [vmem:[%s338_s29] sm:$0xff]  ;;  %v393_v5 = vld [vmem:[%s338_s29 + $0x8] sm:$0xff]  ;;  %389 = vst.msk [vmem:[#allocation3 + $0x8] sm:$0xff] %vm385_vm1, %v787_v13  ;;  %s378_s15 = scalar_lea.vmem %s892_s5, %s708_s9 }
  0x11   : > { %v394_v6 = vpack.c.bf16 %v393_v5, %v392_v4  ;;  %v398_v26 = vld [vmem:[%s358_s7] sm:$0xff]  ;;  %v399_v27 = vld [vmem:[%s358_s7 + $0x8] sm:$0xff] }
  0x12   : > { %v406_v3 = vsel %vm401_vm0, %v397_v2, 0  ;;  %v400_v28 = vpack.c.bf16 %v399_v27, %v398_v26  ;;  %v711_v62 = vld [vmem:[%s368_s12] sm:$0xff]  }
  0x13   : > { %415 = vmatpush.bf16.xpose.msra.mxu0 %v406_v3  ;;  %v712_v1 = vunpack.c.l.bf16 %v711_v62  ;;  %v713_v3 = vunpack.c.h.bf16 %v711_v62 }
  0x14   : > { %v422_v14 = vld [vmem:[#allocation2] sm:$0xff]  ;;  %494 = vmatpush.bf16.msra.mxu1 %v400_v28 }
  0x15   : > { %v423_v19 = vld [vmem:[#allocation2 + $0x8] sm:$0xff] }
  0x16   : > { %v454_v40 = vld [vmem:[#allocation3] sm:$0xff] }
  0x17   : > { %v455_v44 = vld [vmem:[#allocation3 + $0x8] sm:$0xff] }
  0x1a   : > { %701 = vmatmul.msk.bf16.vlgmr.msra.gmra.mxu0 %vm401_vm0, %v394_v6 }
  0x97   : > { %v417_v8 = vpop.f32.mrf.mxu0 }
  0x98   : > { %v424_v9 = vsel %vm401_vm0, %v417_v8, -inf }
  0x99   : > { %425 = vmax.xlane.f32.xlu0 %v424_v9 }
  0x9f   : > { %v419_v10 = vpop.f32.mrf.mxu0 }
  0xa0   : > { %v427_v11 = vsel %vm401_vm0, %v419_v10, -inf }
  0xa1   : > { %428 = vmax.xlane.f32.xlu0 %v427_v11 }
 0x10c   : > { %v426_v15 = vpop.xlane.xlu0 %425 }
 0x10d   : > { %v430_v16 = vmax.f32 %v422_v14, %v426_v15 }
 0x10f   : > { %v432_v17 = vsub.f32 %v422_v14, %v430_v16  ;;  %505 = vst.msk [vmem:[#allocation2] sm:$0xff] %vm385_vm1, %v430_v16  ;;  %440 = vperm.xlu1 %746, %v430_v16  }
 0x111   : > { %v434_v18 = vmul.f32 1.442695, %v432_v17 }
 0x113   : > { %749 = vpow2.f32 %v434_v18 }
 0x114   : > { %v429_v20 = vpop.xlane.xlu0 %428 }
 0x115   : > { %v431_v21 = vmax.f32 %v423_v19, %v429_v20 }
 0x117   : > { %v433_v22 = vsub.f32 %v423_v19, %v431_v21  ;;  %506 = vst.msk [vmem:[#allocation2 + $0x8] sm:$0xff] %vm385_vm1, %v431_v21  ;;  %445 = vperm.xlu1 %746, %v431_v21  }
 0x119   : > { %v750_v23 = vpop.eup %749  ;;  %v436_v24 = vmul.f32 1.442695, %v433_v22 }
 0x11a   : > { %473 = vperm.xlu0 %747, %v750_v23   ;;  %v456_v41 = vmul.f32 %v750_v23, %v454_v40 }
 0x11b   : > { %751 = vpow2.f32 %v436_v24 }
 0x121   : > { %v752_v25 = vpop.eup %751 }
 0x122   : > { %478 = vperm.xlu1 %746, %v752_v25   ;;  %v457_v45 = vmul.f32 %v752_v25, %v455_v44 }
 0x181   : > { %v441_v29 = vpop.permute.xlu1 %440 }
 0x182   : > { %v448_v30 = vsub.f32 %v417_v8, %v441_v29 }
 0x184   : > { %v450_v31 = vmul.f32 1.442695, %v448_v30 }
 0x186   : > { %753 = vpow2.f32 %v450_v31 }
 0x189   : > { %v446_v32 = vpop.permute.xlu1 %445 }
 0x18a   : > { %v449_v33 = vsub.f32 %v419_v10, %v446_v32 }
 0x18c   : > { %v754_v34 = vpop.eup %753  ;;  %v452_v35 = vmul.f32 1.442695, %v449_v33  ;;  %v474_v53 = vpop.permute.xlu0 %473 }
 0x18d   : > { %v458_v36 = vsel %vm401_vm0, %v754_v34, 0.0  ;;  %v481_v55 = vmul.f32 0.0, %v474_v53 }
 0x18e   : > { %755 = vpow2.f32 %v452_v35  ;;  %459 = vadd.xlane.f32.xlu2 %v458_v36 }
 0x194   : > { %v756_v37 = vpop.eup %755  ;;  %v479_v54 = vpop.permute.xlu1 %478 }
 0x195   : > { %v461_v38 = vsel %vm401_vm0, %v756_v37, 0.0  ;;  %v483_v39 = vpack.c.bf16 %v756_v37, %v754_v34  ;;  %v482_v59 = vmul.f32 0.0, %v479_v54 }
 0x196   : > { %462 = vadd.xlane.f32.xlu2 %v461_v38 }
 0x197   : > { %702 = vmatmul.msk.bf16.vlgmr.msra.gmra.mxu1 %vm401_vm0, %v483_v39 }
 0x201   : > { %v460_v42 = vpop.xlane.xlu2 %459 }
 0x202   : > { %v464_v43 = vadd.f32 %v460_v42, %v456_v41 }
 0x204   : > { %467 = vst.msk [vmem:[#allocation3] sm:$0xff] %vm385_vm1, %v464_v43 }
 0x209   : > { %v463_v46 = vpop.xlane.xlu2 %462 }
 0x20a   : > { %v465_v47 = vadd.f32 %v463_v46, %v457_v45 }
 0x20b   : > { %v513_v48 = vld [vmem:[#allocation3] sm:$0xff] }
 0x20c   : > { %468 = vst.msk [vmem:[#allocation3 + $0x8] sm:$0xff] %vm385_vm1, %v465_v47  ;;  %757 = vrcp.f32 %v513_v48 }
 0x212   : > { %v758_v49 = vpop.eup %757 }
 0x213   : > { %519 = vperm.xlu2 %748, %v758_v49   ;;  %v514_v50 = vld [vmem:[#allocation3 + $0x8] sm:$0xff] }
 0x214   : > { %759 = vrcp.f32 %v514_v50  ;;  %v496_v52 = vpop.f32.mrf.mxu1 }
 0x215   : > { %v501_v57 = vadd.f32 %v496_v52, %v481_v55 }
 0x21a   : > { %v760_v51 = vpop.eup %759 }
 0x21b   : > { %524 = vperm.xlu1 %746, %v760_v51  }
 0x21c   : > { %v498_v58 = vpop.f32.mrf.mxu1 }
 0x21d   : > { %v502_v63 = vadd.f32 %v498_v58, %v482_v59 }
 0x26d   : > { %v520_v56 = vpop.permute.xlu2 %519 }
 0x26e   : > { %v527_v60 = vmul.f32 %v520_v56, %v501_v57 }
 0x270   : > { %v530_v2 = vmul.f32 %v529_v61, %v527_v60 }
 0x272   : > { %v536_v6 = vadd.f32 %v712_v1, %v530_v2 }
 0x28d   : > { %v525_v0 = vpop.permute.xlu1 %524 }
 0x28e   : > { %v528_v4 = vmul.f32 %v525_v0, %v502_v63 }
 0x290   : > { %v531_v5 = vmul.f32 %v529_v61, %v528_v4 }
 0x292   : > { %v537_v7 = vadd.f32 %v713_v3, %v531_v5 }
 0x294   : > { %v717_v8 = vpack.c.bf16 %v537_v7, %v536_v6 }
 0x296   : > { %718 = vst [vmem:[%s378_s15] sm:$0xff] %v717_v8  }
 0x297 PF: > { %s16_s22 = sadd.s32 1, %s783_s22   ;;  %s893_s20 = smov %s779_s21 }
 0x298   : > { %p13_p5 = scmp.ge.s32.totalorder %s16_s22, 4   ;;  %s894_s21 = smov %s896_s0 }
 0x29a   :  { %15 = sbr.rel (!%p13_p5) target bundleno = 2 (0x2), region = 87 }

// kernel: squeeze.0
= control target key start
LH: loop header
LB: loop body
LE: loop exit
PB: predicated region body
PF: predicated region fallthrough
CT: control target
= control target key end

     0   :  { %s148_s0 = inlined_call_operand.vmem [shape: f32[18], index: 0, kind: input, shape index: {}]   ;;  %s149_s1 = inlined_call_operand.hbm [shape: f32[2,1,3,3], index: 1, kind: output, shape index: {}]  }
   0x1   :  { %v5_v0 = vld [vmem:[%s148_s0] sm:$0x1] }
   0x2   :  { %6 = vst [vmem:[#allocation3] sm:$0x1] %v5_v0 }
   0x3   :  { %2 = vsyncpa [#allocation1], 0  ;;  %s120_s0 = smov 119   ;;  %s121_s8 = smov 125   ;;  %vm8_vm0 = vcmask 23552  }
   0x4   :  { %s122_s9 = smov 113   ;;  %s123_s10 = smov 116  }
   0x5   :  { %s124_s11 = smov 122   ;;  %s125_s12 = smov [#allocation0]  }
   0x6   :  { %s79_s13 = sshll.u32 %s125_s12, 4  ;;  %s81_s1 = sshll.u32 %s149_s1, 4  ;;  %s80_s13 = int_to_ptr.vmem [resolvable:$true] %s79_s13  ;;  %s82_s1 = int_to_ptr.hbm [resolvable:$true] %s81_s1 }
   0x9   :  { %v22_v1 = vld [vmem:[#allocation3] sm:$0x1]  }
   0xa   :  { %v10_v2 = vld [vmem:[#allocation3] sm:$0x1]   ;;  %23 = vrot.lane.b32.xlu1 %v22_v1, %s120_s0 }
   0xb   :  { %11 = vrot.lane.b32.xlu0 %v10_v2, %s121_s8  ;;  %v34_v3 = vld [vmem:[#allocation3] sm:$0x1]  }
   0xc   :  { %35 = vrot.lane.b32.xlu2 %v34_v3, %s122_s9  ;;  %v28_v4 = vld [vmem:[#allocation3] sm:$0x1]  }
   0xd   :  { %v16_v5 = vld [vmem:[#allocation3] sm:$0x1]  }
   0xe   :  { %v7_v7 = vld [vmem:[#allocation3] sm:$0x1]  }
   0xf   :  { %9 = vst.msk [vmem:[#allocation2] sm:$0x1] %vm8_vm0, %v7_v7  }
  0x12   :  { %29 = vrot.lane.b32.xlu1 %v28_v4, %s123_s10 }
  0x13   :  { %17 = vrot.lane.b32.xlu0 %v16_v5, %s124_s11 }
  0x16   :  { %v42_v9 = vld [vmem:[#allocation2] sm:$0x1] }
  0x17   :  { %45 = vst [vmem:[#allocation0] sm:$0x1] %v42_v9 }
  0x66   :  { %v36_v6 = vpop.permute.xlu2 %35  }
  0x67   :  { %39 = vst.msk [vmem:[#allocation2 + $0x28] sm:$0x1] %vm8_vm0, %v36_v6  }
  0x6e   :  { %v71_v8 = vld [vmem:[#allocation2 + $0x28] sm:$0x1] }
  0x6f   :  { %75 = vst [vmem:[#allocation0 + $0x5] sm:$0x1] %v71_v8 }
  0x7c   :  { %v24_v10 = vpop.permute.xlu1 %23  }
  0x7d   :  { %v12_v11 = vpop.permute.xlu0 %11   ;;  %27 = vst.msk [vmem:[#allocation2 + $0x18] sm:$0x1] %vm8_vm0, %v24_v10  }
  0x7e   :  { %15 = vst.msk [vmem:[#allocation2 + $0x8] sm:$0x1] %vm8_vm0, %v12_v11  }
  0x84   :  { %v59_v12 = vld [vmem:[#allocation2 + $0x18] sm:$0x1]  ;;  %v30_v13 = vpop.permute.xlu1 %29  }
  0x85   :  { %v18_v14 = vpop.permute.xlu0 %17   ;;  %63 = vst [vmem:[#allocation0 + $0x3] sm:$0x1] %v59_v12  ;;  %v47_v15 = vld [vmem:[#allocation2 + $0x8] sm:$0x1] }
  0x86   :  { %51 = vst [vmem:[#allocation0 + $0x1] sm:$0x1] %v47_v15 }
  0x87   :  { %33 = vst.msk [vmem:[#allocation2 + $0x20] sm:$0x1] %vm8_vm0, %v30_v13  }
  0x88   :  { %21 = vst.msk [vmem:[#allocation2 + $0x10] sm:$0x1] %vm8_vm0, %v18_v14  }
  0x8e   :  { %v65_v16 = vld [vmem:[#allocation2 + $0x20] sm:$0x1] }
  0x8f   :  { %69 = vst [vmem:[#allocation0 + $0x4] sm:$0x1] %v65_v16  ;;  %v53_v17 = vld [vmem:[#allocation2 + $0x10] sm:$0x1] }
  0x90   :  { %57 = vst [vmem:[#allocation0 + $0x2] sm:$0x1] %v53_v17 }
  0x91   :  { %84 = dma.vmem_to_hbm [thread:$0]  %s80_s13, 96, %s82_s1, [#allocation1]  }
  0x92   :  { %118 = dma.done.wait [#allocation1], 96  }
  0x93   :  { %119 = vsyncadd [#allocation1], 4294967200 }
  0x94   :  { %87 = vsyncpa [#allocation1], 1 }

// kernel: discriminator_forward.9
= control target key start
LH: loop header
LB: loop body
LE: loop exit
PB: predicated region body
PF: predicated region fallthrough
CT: control target
= control target key end

     0   :  { %s2488_s0 = inlined_call_operand.vmem [shape: bf16[128,2048], index: 0, kind: input, shape index: {}]   ;;  %s2489_s1 = inlined_call_operand.vmem [shape: bf16[1,2048], index: 1, kind: input, shape index: {}]   ;;  %s2490_s2 = inlined_call_operand.<no memory space> [shape: f32[1,1], index: 2, kind: input, shape index: {}]   ;;  %s2491_s3 = inlined_call_operand.vmem [shape: f32[1,128], index: 3, kind: output, shape index: {}]  }
   0x1   :  { %v1486_v0 = vld [vmem:[%s2488_s0 + $0x380] sm:$0xf]  ;;  %v1660_v2 = vld [vmem:[%s2488_s0 + $0x384] sm:$0xf]  ;;  %v1494_v5 = vld [vmem:[%s2488_s0 + $0x388] sm:$0xf] }
   0x2   :  { %v1668_v1 = vld [vmem:[%s2488_s0 + $0x3bc] sm:$0xf0]  ;;  %v1488_v4 = vld [vmem:[%s2488_s0 + $0x3c0] sm:$0xf0]  ;;  %v1669_v6 = vld [vmem:[%s2488_s0 + $0x3c4] sm:$0xf0] }
   0x3   :  { %v1487_v3 = vor.u32 %v1668_v1, %v1486_v0  ;;  %v1491_v7 = vor.u32 %v1660_v2, %v1488_v4  ;;  %v1495_v8 = vor.u32 %v1669_v6, %v1494_v5  ;;  %v1661_v9 = vld [vmem:[%s2488_s0 + $0x38c] sm:$0xf]  ;;  %v1422_v12 = vld [vmem:[%s2488_s0 + $0x300] sm:$0xf]  ;;  %v1644_v14 = vld [vmem:[%s2488_s0 + $0x304] sm:$0xf] }
   0x4   :  { %v1496_v10 = vld [vmem:[%s2488_s0 + $0x3c8] sm:$0xf0]  ;;  %v1652_v13 = vld [vmem:[%s2488_s0 + $0x33c] sm:$0xf0]  ;;  %v1424_v15 = vld [vmem:[%s2488_s0 + $0x340] sm:$0xf0] }
   0x5   :  { %823 = vmatpush.bf16.xpose.msra.mxu0 %v1487_v3  ;;  %v1499_v11 = vor.u32 %v1661_v9, %v1496_v10  ;;  %836 = vmatpush.bf16.xpose.msra.mxu1 %v1491_v7  ;;  %v1430_v16 = vld [vmem:[%s2488_s0 + $0x308] sm:$0xf]  ;;  %v1645_v18 = vld [vmem:[%s2488_s0 + $0x30c] sm:$0xf]  ;;  %v1423_v20 = vor.u32 %v1652_v13, %v1422_v12  ;;  %v1427_v21 = vor.u32 %v1644_v14, %v1424_v15  ;;  %v1358_v24 = vld [vmem:[%s2488_s0 + $0x280] sm:$0xf] }
   0x6   :  { %849 = vmatpush.bf16.xpose.msra.mxu2 %v1495_v8  ;;  %v1653_v17 = vld [vmem:[%s2488_s0 + $0x344] sm:$0xf0]  ;;  %v1432_v19 = vld [vmem:[%s2488_s0 + $0x348] sm:$0xf0]  ;;  %v1636_v25 = vld [vmem:[%s2488_s0 + $0x2bc] sm:$0xf0] }
   0x7   :  { %862 = vmatpush.bf16.xpose.msra.mxu3 %v1499_v11  ;;  %v1431_v22 = vor.u32 %v1653_v17, %v1430_v16  ;;  %v1435_v23 = vor.u32 %v1645_v18, %v1432_v19  ;;  %v1628_v26 = vld [vmem:[%s2488_s0 + $0x284] sm:$0xf]  ;;  %v1366_v28 = vld [vmem:[%s2488_s0 + $0x288] sm:$0xf]  ;;  %v1629_v30 = vld [vmem:[%s2488_s0 + $0x28c] sm:$0xf]  ;;  %v1359_v32 = vor.u32 %v1636_v25, %v1358_v24 }
   0x8   :  { %v1360_v27 = vld [vmem:[%s2488_s0 + $0x2c0] sm:$0xf0]  ;;  %v1637_v29 = vld [vmem:[%s2488_s0 + $0x2c4] sm:$0xf0]  ;;  %v1368_v31 = vld [vmem:[%s2488_s0 + $0x2c8] sm:$0xf0] }
   0x9   :  { %v1363_v33 = vor.u32 %v1628_v26, %v1360_v27  ;;  %v1367_v34 = vor.u32 %v1637_v29, %v1366_v28  ;;  %v1371_v35 = vor.u32 %v1629_v30, %v1368_v31  ;;  %v1294_v36 = vld [vmem:[%s2488_s0 + $0x200] sm:$0xf]  ;;  %v1612_v38 = vld [vmem:[%s2488_s0 + $0x204] sm:$0xf]  ;;  %v1302_v40 = vld [vmem:[%s2488_s0 + $0x208] sm:$0xf] }
   0xa   :  { %v1620_v37 = vld [vmem:[%s2488_s0 + $0x23c] sm:$0xf0]  ;;  %v1296_v39 = vld [vmem:[%s2488_s0 + $0x240] sm:$0xf0]  ;;  %v1621_v41 = vld [vmem:[%s2488_s0 + $0x244] sm:$0xf0] }
   0xb   :  { %v1613_v42 = vld [vmem:[%s2488_s0 + $0x20c] sm:$0xf]  ;;  %v1295_v44 = vor.u32 %v1620_v37, %v1294_v36  ;;  %v1299_v45 = vor.u32 %v1612_v38, %v1296_v39  ;;  %v1303_v46 = vor.u32 %v1621_v41, %v1302_v40  ;;  %v1230_v48 = vld [vmem:[%s2488_s0 + $0x180] sm:$0xf]  ;;  %v1596_v50 = vld [vmem:[%s2488_s0 + $0x184] sm:$0xf] }
   0xc   :  { %v1304_v43 = vld [vmem:[%s2488_s0 + $0x248] sm:$0xf0]  ;;  %v1604_v49 = vld [vmem:[%s2488_s0 + $0x1bc] sm:$0xf0]  ;;  %v1232_v51 = vld [vmem:[%s2488_s0 + $0x1c0] sm:$0xf0] }
   0xd   :  { %824 = vmatpush.bf16.xpose.msra.mxu0 %v1423_v20  ;;  %837 = vmatpush.bf16.xpose.msra.mxu1 %v1427_v21  ;;  %v1307_v47 = vor.u32 %v1613_v42, %v1304_v43  ;;  %v1238_v52 = vld [vmem:[%s2488_s0 + $0x188] sm:$0xf]  ;;  %v1597_v54 = vld [vmem:[%s2488_s0 + $0x18c] sm:$0xf]  ;;  %v1231_v56 = vor.u32 %v1604_v49, %v1230_v48  ;;  %v1235_v57 = vor.u32 %v1596_v50, %v1232_v51  ;;  %v1166_v60 = vld [vmem:[%s2488_s0 + $0x100] sm:$0xf] }
   0xe   :  { %850 = vmatpush.bf16.xpose.msra.mxu2 %v1431_v22  ;;  %v1605_v53 = vld [vmem:[%s2488_s0 + $0x1c4] sm:$0xf0]  ;;  %v1240_v55 = vld [vmem:[%s2488_s0 + $0x1c8] sm:$0xf0]  ;;  %v1588_v61 = vld [vmem:[%s2488_s0 + $0x13c] sm:$0xf0] }
   0xf   :  { %863 = vmatpush.bf16.xpose.msra.mxu3 %v1435_v23  ;;  %v1239_v58 = vor.u32 %v1605_v53, %v1238_v52  ;;  %v1243_v59 = vor.u32 %v1597_v54, %v1240_v55  ;;  %v1580_v62 = vld [vmem:[%s2488_s0 + $0x104] sm:$0xf]  ;;  %v1174_v0 = vld [vmem:[%s2488_s0 + $0x108] sm:$0xf]  ;;  %v1581_v2 = vld [vmem:[%s2488_s0 + $0x10c] sm:$0xf]  ;;  %v1167_v4 = vor.u32 %v1588_v61, %v1166_v60 }
  0x10   :  { %v1168_v63 = vld [vmem:[%s2488_s0 + $0x140] sm:$0xf0]  ;;  %v1589_v1 = vld [vmem:[%s2488_s0 + $0x144] sm:$0xf0]  ;;  %v1176_v3 = vld [vmem:[%s2488_s0 + $0x148] sm:$0xf0] }
  0x11   :  { %v1171_v5 = vor.u32 %v1580_v62, %v1168_v63  ;;  %v1175_v6 = vor.u32 %v1589_v1, %v1174_v0  ;;  %v1179_v7 = vor.u32 %v1581_v2, %v1176_v3  ;;  %v1102_v8 = vld [vmem:[%s2488_s0 + $0x80] sm:$0xf]  ;;  %v1564_v10 = vld [vmem:[%s2488_s0 + $0x84] sm:$0xf]  ;;  %v1110_v12 = vld [vmem:[%s2488_s0 + $0x88] sm:$0xf] }
  0x12   :  { %v1572_v9 = vld [vmem:[%s2488_s0 + $0xbc] sm:$0xf0]  ;;  %v1104_v11 = vld [vmem:[%s2488_s0 + $0xc0] sm:$0xf0]  ;;  %v1573_v13 = vld [vmem:[%s2488_s0 + $0xc4] sm:$0xf0] }
  0x13   :  { %v1565_v14 = vld [vmem:[%s2488_s0 + $0x8c] sm:$0xf]  ;;  %v1103_v16 = vor.u32 %v1572_v9, %v1102_v8  ;;  %v1107_v17 = vor.u32 %v1564_v10, %v1104_v11  ;;  %v1111_v18 = vor.u32 %v1573_v13, %v1110_v12  ;;  %v1038_v20 = vld [vmem:[%s2488_s0] sm:$0xf]  ;;  %v1548_v22 = vld [vmem:[%s2488_s0 + $0x4] sm:$0xf] }
  0x14   :  { %v1112_v15 = vld [vmem:[%s2488_s0 + $0xc8] sm:$0xf0]  ;;  %v1556_v21 = vld [vmem:[%s2488_s0 + $0x3c] sm:$0xf0]  ;;  %v1040_v23 = vld [vmem:[%s2488_s0 + $0x40] sm:$0xf0] }
  0x15   :  { %825 = vmatpush.bf16.xpose.msra.mxu0 %v1359_v32  ;;  %838 = vmatpush.bf16.xpose.msra.mxu1 %v1363_v33  ;;  %v1115_v19 = vor.u32 %v1565_v14, %v1112_v15  ;;  %v1046_v24 = vld [vmem:[%s2488_s0 + $0x8] sm:$0xf]  ;;  %v1549_v26 = vld [vmem:[%s2488_s0 + $0xc] sm:$0xf]  ;;  %v1502_v28 = vld [vmem:[%s2488_s0 + $0x390] sm:$0xf]  ;;  %v1039_v31 = vor.u32 %v1556_v21, %v1038_v20 }
  0x16   :  { %851 = vmatpush.bf16.xpose.msra.mxu2 %v1367_v34  ;;  %v1557_v25 = vld [vmem:[%s2488_s0 + $0x44] sm:$0xf0]  ;;  %v1048_v27 = vld [vmem:[%s2488_s0 + $0x48] sm:$0xf0]  ;;  %v1670_v29 = vld [vmem:[%s2488_s0 + $0x3cc] sm:$0xf0] }
  0x17   :  { %864 = vmatpush.bf16.xpose.msra.mxu3 %v1371_v35  ;;  %v1662_v30 = vld [vmem:[%s2488_s0 + $0x394] sm:$0xf]  ;;  %v1510_v33 = vld [vmem:[%s2488_s0 + $0x398] sm:$0xf]  ;;  %v1043_v35 = vor.u32 %v1548_v22, %v1040_v23  ;;  %v1047_v36 = vor.u32 %v1557_v25, %v1046_v24  ;;  %v1663_v37 = vld [vmem:[%s2488_s0 + $0x39c] sm:$0xf]  ;;  %v1051_v39 = vor.u32 %v1549_v26, %v1048_v27  ;;  %v1503_v40 = vor.u32 %v1670_v29, %v1502_v28 }
  0x18   :  { %v1504_v32 = vld [vmem:[%s2488_s0 + $0x3d0] sm:$0xf0]  ;;  %v1671_v34 = vld [vmem:[%s2488_s0 + $0x3d4] sm:$0xf0]  ;;  %v1512_v38 = vld [vmem:[%s2488_s0 + $0x3d8] sm:$0xf0] }
  0x19   :  { %v1507_v41 = vor.u32 %v1662_v30, %v1504_v32  ;;  %v1511_v42 = vor.u32 %v1671_v34, %v1510_v33  ;;  %v1515_v43 = vor.u32 %v1663_v37, %v1512_v38  ;;  %v1446_v48 = vld [vmem:[%s2488_s0 + $0x318] sm:$0xf]  ;;  %v1647_v50 = vld [vmem:[%s2488_s0 + $0x31c] sm:$0xf]  ;;  %v15_v60 = vld [vmem:[%s2489_s1] sm:$0xff] }
  0x1a   :  { %v1655_v49 = vld [vmem:[%s2488_s0 + $0x354] sm:$0xf0]  ;;  %v1448_v51 = vld [vmem:[%s2488_s0 + $0x358] sm:$0xf0]  ;;  %148 = vst [vmem:[#allocation1] ss:$9 sm:$0xff] %v15_v60 }
  0x1b   :  { %v1447_v54 = vor.u32 %v1655_v49, %v1446_v48  ;;  %v1451_v55 = vor.u32 %v1647_v50, %v1448_v51  ;;  %v1382_v61 = vld [vmem:[%s2488_s0 + $0x298] sm:$0xf]  ;;  %v1631_v63 = vld [vmem:[%s2488_s0 + $0x29c] sm:$0xf]  ;;  %v1312_v8 = vld [vmem:[%s2488_s0 + $0x250] sm:$0xf0] }
  0x1c   :  { %v1639_v62 = vld [vmem:[%s2488_s0 + $0x2d4] sm:$0xf0]  ;;  %v1384_v0 = vld [vmem:[%s2488_s0 + $0x2d8] sm:$0xf0]  ;;  %v1246_v21 = vld [vmem:[%s2488_s0 + $0x190] sm:$0xf] }
  0x1d   :  { %826 = vmatpush.bf16.xpose.msra.mxu0 %v1295_v44  ;;  %839 = vmatpush.bf16.xpose.msra.mxu1 %v1299_v45  ;;  %v1438_v44 = vld [vmem:[%s2488_s0 + $0x310] sm:$0xf]  ;;  %v1383_v3 = vor.u32 %v1639_v62, %v1382_v61  ;;  %v1318_v9 = vld [vmem:[%s2488_s0 + $0x218] sm:$0xf]  ;;  %v1615_v15 = vld [vmem:[%s2488_s0 + $0x21c] sm:$0xf] }
  0x1e   :  { %852 = vmatpush.bf16.xpose.msra.mxu2 %v1303_v46  ;;  %v1654_v45 = vld [vmem:[%s2488_s0 + $0x34c] sm:$0xf0]  ;;  %v1646_v46 = vld [vmem:[%s2488_s0 + $0x314] sm:$0xf]  ;;  %v1623_v10 = vld [vmem:[%s2488_s0 + $0x254] sm:$0xf0] }
  0x1f   :  { %865 = vmatpush.bf16.xpose.msra.mxu3 %v1307_v47  ;;  %v1440_v47 = vld [vmem:[%s2488_s0 + $0x350] sm:$0xf0]  ;;  %v1439_v52 = vor.u32 %v1654_v45, %v1438_v44  ;;  %v1606_v22 = vld [vmem:[%s2488_s0 + $0x1cc] sm:$0xf0]  ;;  %v1254_v25 = vld [vmem:[%s2488_s0 + $0x198] sm:$0xf] }
  0x20   :  { %v1443_v53 = vor.u32 %v1646_v46, %v1440_v47  ;;  %v1598_v23 = vld [vmem:[%s2488_s0 + $0x194] sm:$0xf]  ;;  %v1607_v26 = vld [vmem:[%s2488_s0 + $0x1d4] sm:$0xf0]  ;;  %v1599_v27 = vld [vmem:[%s2488_s0 + $0x19c] sm:$0xf]  ;;  %v1247_v29 = vor.u32 %v1606_v22, %v1246_v21 }
  0x21   :  { %v151_v11 = vld [vmem:[#allocation1 + $0x12] sm:$0xff]  ;;  %v149_v12 = vld [vmem:[#allocation1] sm:$0xff]  ;;  %v150_v14 = vld [vmem:[#allocation1 + $0x9] sm:$0xff] }
  0x22   :  { %v152_v13 = vld [vmem:[#allocation1 + $0x1b] sm:$0xff]  ;;  %v1248_v24 = vld [vmem:[%s2488_s0 + $0x1d0] sm:$0xf0]  ;;  %v1182_v33 = vld [vmem:[%s2488_s0 + $0x110] sm:$0xf] }
  0x23   :  { %v1256_v28 = vld [vmem:[%s2488_s0 + $0x1d8] sm:$0xf0]  ;;  %v1251_v30 = vor.u32 %v1598_v23, %v1248_v24  ;;  %v1590_v34 = vld [vmem:[%s2488_s0 + $0x14c] sm:$0xf0]  ;;  %v1190_v37 = vld [vmem:[%s2488_s0 + $0x118] sm:$0xf] }
  0x24   :  { %v1259_v32 = vor.u32 %v1599_v27, %v1256_v28  ;;  %v1591_v38 = vld [vmem:[%s2488_s0 + $0x154] sm:$0xf0]  ;;  %v2040_v44 = vld [vmem:[#allocation1 + $0x24] sm:$0xff]  ;;  %v2044_v46 = vld [vmem:[#allocation1 + $0x2d] sm:$0xff] }
  0x25   :  { %827 = vmatpush.bf16.xpose.msra.mxu0 %v1231_v56  ;;  %840 = vmatpush.bf16.xpose.msra.mxu1 %v1235_v57  ;;  %v1374_v56 = vld [vmem:[%s2488_s0 + $0x290] sm:$0xf]  ;;  %v2042_v45 = vld [vmem:[#allocation1 + $0x3f] sm:$0xff]  ;;  %v1191_v48 = vor.u32 %v1591_v38, %v1190_v37  ;;  %v1657_v27 = vld [vmem:[%s2488_s0 + $0x364] sm:$0xf0] }
  0x26   :  { %853 = vmatpush.bf16.xpose.msra.mxu2 %v1239_v58  ;;  %v1638_v57 = vld [vmem:[%s2488_s0 + $0x2cc] sm:$0xf0]  ;;  %v1630_v58 = vld [vmem:[%s2488_s0 + $0x294] sm:$0xf]  ;;  %v1454_v22 = vld [vmem:[%s2488_s0 + $0x320] sm:$0xf] }
  0x27   :  { %866 = vmatpush.bf16.xpose.msra.mxu3 %v1243_v59  ;;  %v1376_v59 = vld [vmem:[%s2488_s0 + $0x2d0] sm:$0xf0]  ;;  %v1375_v1 = vor.u32 %v1638_v57, %v1374_v56  ;;  %v1118_v50 = vld [vmem:[%s2488_s0 + $0x90] sm:$0xf]  ;;  %v1567_v56 = vld [vmem:[%s2488_s0 + $0x9c] sm:$0xf] }
  0x28   :  { %v1379_v2 = vor.u32 %v1630_v58, %v1376_v59  ;;  %v1574_v51 = vld [vmem:[%s2488_s0 + $0xcc] sm:$0xf0]  ;;  %v1128_v57 = vld [vmem:[%s2488_s0 + $0xd8] sm:$0xf0]  ;;  %v1656_v23 = vld [vmem:[%s2488_s0 + $0x35c] sm:$0xf0] }
  0x29   :  { %v1119_v58 = vor.u32 %v1574_v51, %v1118_v50  ;;  %v1131_v61 = vor.u32 %v1567_v56, %v1128_v57  ;;  %v1054_v62 = vld [vmem:[%s2488_s0 + $0x10] sm:$0xf]  ;;  %v1648_v24 = vld [vmem:[%s2488_s0 + $0x324] sm:$0xf]  ;;  %v1649_v28 = vld [vmem:[%s2488_s0 + $0x32c] sm:$0xf] }
  0x2a   :  { %v1392_v37 = vld [vmem:[%s2488_s0 + $0x2e0] sm:$0xf0]  ;;  %v1398_v38 = vld [vmem:[%s2488_s0 + $0x2a8] sm:$0xf] }
  0x2b   :  { %v1334_v50 = vld [vmem:[%s2488_s0 + $0x228] sm:$0xf] }
  0x2c   :  { %v1625_v51 = vld [vmem:[%s2488_s0 + $0x264] sm:$0xf0] }
  0x2d   :  { %828 = vmatpush.bf16.xpose.msra.mxu0 %v1167_v4  ;;  %841 = vmatpush.bf16.xpose.msra.mxu1 %v1171_v5  ;;  %v1387_v4 = vor.u32 %v1631_v63, %v1384_v0  ;;  %v1310_v5 = vld [vmem:[%s2488_s0 + $0x210] sm:$0xf]  ;;  %v1550_v0 = vld [vmem:[%s2488_s0 + $0x14] sm:$0xf]  ;;  %v1335_v56 = vor.u32 %v1625_v51, %v1334_v50 }
  0x2e   :  { %854 = vmatpush.bf16.xpose.msra.mxu2 %v1175_v6  ;;  %v1622_v6 = vld [vmem:[%s2488_s0 + $0x24c] sm:$0xf0] }
  0x2f   :  { %867 = vmatpush.bf16.xpose.msra.mxu3 %v1179_v7  ;;  %v1614_v7 = vld [vmem:[%s2488_s0 + $0x214] sm:$0xf]  ;;  %v1558_v63 = vld [vmem:[%s2488_s0 + $0x4c] sm:$0xf0] }
  0x35   :  { %829 = vmatpush.bf16.xpose.msra.mxu0 %v1103_v16  ;;  %842 = vmatpush.bf16.xpose.msra.mxu1 %v1107_v17  ;;  %v1320_v16 = vld [vmem:[%s2488_s0 + $0x258] sm:$0xf0]  ;;  %v1311_v17 = vor.u32 %v1622_v6, %v1310_v5  ;;  %v1518_v6 = vld [vmem:[%s2488_s0 + $0x3a0] sm:$0xf] }
  0x36   :  { %855 = vmatpush.bf16.xpose.msra.mxu2 %v1111_v18  ;;  %v1315_v18 = vor.u32 %v1614_v7, %v1312_v8  ;;  %v1323_v20 = vor.u32 %v1615_v15, %v1320_v16  ;;  %v1064_v5 = vld [vmem:[%s2488_s0 + $0x58] sm:$0xf0]  ;;  %v1672_v7 = vld [vmem:[%s2488_s0 + $0x3dc] sm:$0xf0]  ;;  %v1664_v8 = vld [vmem:[%s2488_s0 + $0x3a4] sm:$0xf] }
  0x37   :  { %868 = vmatpush.bf16.xpose.msra.mxu3 %v1115_v19  ;;  %v1319_v19 = vor.u32 %v1623_v10, %v1318_v9  ;;  %v1055_v9 = vor.u32 %v1558_v63, %v1054_v62  ;;  %v1520_v10 = vld [vmem:[%s2488_s0 + $0x3e0] sm:$0xf0]  ;;  %v1665_v15 = vld [vmem:[%s2488_s0 + $0x3ac] sm:$0xf]  ;;  %v1270_v62 = vld [vmem:[%s2488_s0 + $0x1a8] sm:$0xf] }
  0x38   :  { %v1528_v16 = vld [vmem:[%s2488_s0 + $0x3e8] sm:$0xf0]  ;;  %v1609_v63 = vld [vmem:[%s2488_s0 + $0x1e4] sm:$0xf0] }
  0x39   :  { %v1531_v21 = vor.u32 %v1665_v15, %v1528_v16 }
  0x3d   :  { %830 = vmatpush.bf16.xpose.msra.mxu0 %v1039_v31  ;;  %843 = vmatpush.bf16.xpose.msra.mxu1 %v1043_v35  ;;  %v1255_v31 = vor.u32 %v1607_v26, %v1254_v25  ;;  %v1582_v35 = vld [vmem:[%s2488_s0 + $0x114] sm:$0xf]  ;;  %v1456_v25 = vld [vmem:[%s2488_s0 + $0x360] sm:$0xf0]  ;;  %v1462_v26 = vld [vmem:[%s2488_s0 + $0x328] sm:$0xf] }
  0x3e   :  { %856 = vmatpush.bf16.xpose.msra.mxu2 %v1047_v36  ;;  %v1184_v36 = vld [vmem:[%s2488_s0 + $0x150] sm:$0xf0] }
  0x3f   :  { %869 = vmatpush.bf16.xpose.msra.mxu3 %v1051_v39  ;;  %v16_v39 = vld [vmem:[%s2489_s1 + $0x8] sm:$0xff]  ;;  %v1187_v47 = vor.u32 %v1582_v35, %v1184_v36  ;;  %v1640_v35 = vld [vmem:[%s2488_s0 + $0x2dc] sm:$0xf0]  ;;  %v1632_v36 = vld [vmem:[%s2488_s0 + $0x2a4] sm:$0xf] }
  0x44   :  { %831 = vmatmul.bf16.vlgmr.msra.gmra.mxu0 %v149_v12  ;;  %844 = vmatmul.bf16.vlgmr.msra.gmra.mxu1 %v150_v14  ;;  %v1673_v12 = vld [vmem:[%s2488_s0 + $0x3e4] sm:$0xf0] }
  0x45   :  { %875 = vmatpush.bf16.xpose.msrb.mxu0 %v1503_v40  ;;  %888 = vmatpush.bf16.xpose.msrb.mxu1 %v1507_v41  ;;  %v1583_v40 = vld [vmem:[%s2488_s0 + $0x11c] sm:$0xf] }
  0x46   :  { %901 = vmatpush.bf16.xpose.msrb.mxu2 %v1511_v42  ;;  %870 = vmatmul.bf16.vlgmr.msra.gmra.mxu3 %v152_v13  ;;  %v1192_v41 = vld [vmem:[%s2488_s0 + $0x158] sm:$0xf0] }
  0x47   :  { %914 = vmatpush.bf16.xpose.msrb.mxu3 %v1515_v43  ;;  %857 = vmatmul.bf16.vlgmr.msra.gmra.mxu2 %v151_v11  ;;  %v2038_v42 = vld [vmem:[#allocation1 + $0x36] sm:$0xff]  ;;  %v1183_v43 = vor.u32 %v1590_v34, %v1182_v33  ;;  %v1195_v49 = vor.u32 %v1583_v40, %v1192_v41  ;;  %v1526_v11 = vld [vmem:[%s2488_s0 + $0x3a8] sm:$0xf]  ;;  %v1390_v34 = vld [vmem:[%s2488_s0 + $0x2a0] sm:$0xf] }
  0x48   :  { %158 = vst [vmem:[#allocation1] ss:$9 sm:$0xff] %v16_v39  ;;  %v1641_v39 = vld [vmem:[%s2488_s0 + $0x2e4] sm:$0xf0]  ;;  %v1633_v40 = vld [vmem:[%s2488_s0 + $0x2ac] sm:$0xf] }
  0x49   :  { %v1400_v41 = vld [vmem:[%s2488_s0 + $0x2e8] sm:$0xf0] }
  0x4d   :  { %876 = vmatpush.bf16.xpose.msrb.mxu0 %v1439_v52  ;;  %889 = vmatpush.bf16.xpose.msrb.mxu1 %v1443_v53  ;;  %v1566_v52 = vld [vmem:[%s2488_s0 + $0x94] sm:$0xf] }
  0x4e   :  { %902 = vmatpush.bf16.xpose.msrb.mxu2 %v1447_v54  ;;  %v1120_v53 = vld [vmem:[%s2488_s0 + $0xd0] sm:$0xf0]  ;;  %v1126_v54 = vld [vmem:[%s2488_s0 + $0x98] sm:$0xf] }
  0x4f   :  { %915 = vmatpush.bf16.xpose.msrb.mxu3 %v1451_v55  ;;  %v1575_v55 = vld [vmem:[%s2488_s0 + $0xd4] sm:$0xf0]  ;;  %v1123_v59 = vor.u32 %v1566_v52, %v1120_v53  ;;  %v1617_v52 = vld [vmem:[%s2488_s0 + $0x22c] sm:$0xf] }
  0x50   :  { %v1127_v60 = vor.u32 %v1575_v55, %v1126_v54  ;;  %v1336_v53 = vld [vmem:[%s2488_s0 + $0x268] sm:$0xf0] }
  0x51   :  { %v1339_v57 = vor.u32 %v1617_v52, %v1336_v53 }
  0x55   :  { %877 = vmatpush.bf16.xpose.msrb.mxu0 %v1375_v1  ;;  %890 = vmatpush.bf16.xpose.msrb.mxu1 %v1379_v2  ;;  %v1056_v1 = vld [vmem:[%s2488_s0 + $0x50] sm:$0xf0]  ;;  %v1062_v2 = vld [vmem:[%s2488_s0 + $0x18] sm:$0xf] }
  0x56   :  { %903 = vmatpush.bf16.xpose.msrb.mxu2 %v1383_v3  ;;  %v1559_v3 = vld [vmem:[%s2488_s0 + $0x54] sm:$0xf0]  ;;  %v1059_v13 = vor.u32 %v1550_v0, %v1056_v1  ;;  %v1601_v0 = vld [vmem:[%s2488_s0 + $0x1ac] sm:$0xf] }
  0x57   :  { %916 = vmatpush.bf16.xpose.msrb.mxu3 %v1387_v4  ;;  %v1551_v4 = vld [vmem:[%s2488_s0 + $0x1c] sm:$0xf]  ;;  %v1063_v14 = vor.u32 %v1559_v3, %v1062_v2  ;;  %v1272_v1 = vld [vmem:[%s2488_s0 + $0x1e8] sm:$0xf0] }
  0x5d   :  { %878 = vmatpush.bf16.xpose.msrb.mxu0 %v1311_v17  ;;  %891 = vmatpush.bf16.xpose.msrb.mxu1 %v1315_v18  ;;  %v1067_v17 = vor.u32 %v1551_v4, %v1064_v5  ;;  %v1519_v18 = vor.u32 %v1672_v7, %v1518_v6  ;;  %v1271_v4 = vor.u32 %v1609_v63, %v1270_v62  ;;  %v1198_v6 = vld [vmem:[%s2488_s0 + $0x120] sm:$0xf]  ;;  %v160_v62 = vld [vmem:[#allocation1 + $0x9] sm:$0xff]  ;;  %v1651_v63 = vld [vmem:[%s2488_s0 + $0x33c] sm:$0xf] }
  0x5e   :  { %904 = vmatpush.bf16.xpose.msrb.mxu2 %v1319_v19  ;;  %v1523_v19 = vor.u32 %v1664_v8, %v1520_v10  ;;  %v1275_v5 = vor.u32 %v1601_v0, %v1272_v1  ;;  %v1592_v7 = vld [vmem:[%s2488_s0 + $0x15c] sm:$0xf0]  ;;  %v1584_v8 = vld [vmem:[%s2488_s0 + $0x124] sm:$0xf]  ;;  %v1206_v10 = vld [vmem:[%s2488_s0 + $0x128] sm:$0xf] }
  0x5f   :  { %917 = vmatpush.bf16.xpose.msrb.mxu3 %v1323_v20  ;;  %v1527_v20 = vor.u32 %v1673_v12, %v1526_v11  ;;  %v1593_v11 = vld [vmem:[%s2488_s0 + $0x164] sm:$0xf0]  ;;  %v1585_v12 = vld [vmem:[%s2488_s0 + $0x12c] sm:$0xf]  ;;  %v1480_v0 = vld [vmem:[%s2488_s0 + $0x378] sm:$0xf0] }
  0x60   :  { %v1207_v16 = vor.u32 %v1593_v11, %v1206_v10  ;;  %v162_v1 = vld [vmem:[#allocation1 + $0x1b] sm:$0xff] }
  0x61   :  { %v1414_v10 = vld [vmem:[%s2488_s0 + $0x2b8] sm:$0xf] }
  0x62   :  { %v1643_v11 = vld [vmem:[%s2488_s0 + $0x2f4] sm:$0xf0] }
  0x65   :  { %879 = vmatpush.bf16.xpose.msrb.mxu0 %v1247_v29  ;;  %892 = vmatpush.bf16.xpose.msrb.mxu1 %v1251_v30  ;;  %v1464_v29 = vld [vmem:[%s2488_s0 + $0x368] sm:$0xf0]  ;;  %v1455_v30 = vor.u32 %v1656_v23, %v1454_v22  ;;  %v1142_v22 = vld [vmem:[%s2488_s0 + $0xa8] sm:$0xf] }
  0x66   :  { %905 = vmatpush.bf16.xpose.msrb.mxu2 %v1255_v31  ;;  %v1459_v31 = vor.u32 %v1648_v24, %v1456_v25  ;;  %v1467_v33 = vor.u32 %v1649_v28, %v1464_v29  ;;  %v1577_v23 = vld [vmem:[%s2488_s0 + $0xe4] sm:$0xf0]  ;;  %v1569_v24 = vld [vmem:[%s2488_s0 + $0xac] sm:$0xf] }
  0x67   :  { %918 = vmatpush.bf16.xpose.msrb.mxu3 %v1259_v32  ;;  %v1463_v32 = vor.u32 %v1657_v27, %v1462_v26  ;;  %v1144_v25 = vld [vmem:[%s2488_s0 + $0xe8] sm:$0xf0]  ;;  %v1143_v28 = vor.u32 %v1577_v23, %v1142_v22  ;;  %v1350_v22 = vld [vmem:[%s2488_s0 + $0x238] sm:$0xf] }
  0x68   :  { %v1147_v29 = vor.u32 %v1569_v24, %v1144_v25  ;;  %v1627_v23 = vld [vmem:[%s2488_s0 + $0x274] sm:$0xf0]  ;;  %v1619_v24 = vld [vmem:[%s2488_s0 + $0x23c] sm:$0xf] }
  0x69   :  { %v1352_v25 = vld [vmem:[%s2488_s0 + $0x278] sm:$0xf0] }
  0x6d   :  { %880 = vmatpush.bf16.xpose.msrb.mxu0 %v1183_v43  ;;  %893 = vmatpush.bf16.xpose.msrb.mxu1 %v1187_v47  ;;  %v1395_v43 = vor.u32 %v1632_v36, %v1392_v37  ;;  %v1624_v47 = vld [vmem:[%s2488_s0 + $0x25c] sm:$0xf0]  ;;  %v1553_v36 = vld [vmem:[%s2488_s0 + $0x2c] sm:$0xf] }
  0x6e   :  { %906 = vmatpush.bf16.xpose.msrb.mxu2 %v1191_v48  ;;  %v1616_v48 = vld [vmem:[%s2488_s0 + $0x224] sm:$0xf]  ;;  %v1080_v37 = vld [vmem:[%s2488_s0 + $0x68] sm:$0xf0] }
  0x6f   :  { %919 = vmatpush.bf16.xpose.msrb.mxu3 %v1195_v49  ;;  %v1328_v49 = vld [vmem:[%s2488_s0 + $0x260] sm:$0xf0] }
  0x70   :  { %v1331_v55 = vor.u32 %v1616_v48, %v1328_v49  ;;  %v1544_v48 = vld [vmem:[%s2488_s0 + $0x3f8] sm:$0xf0]  ;;  %v1083_v49 = vor.u32 %v1553_v36, %v1080_v37  ;;  %v146_v36 = vstv %s2490_s2 }
  0x71   :  { %v1603_v37 = vld [vmem:[%s2488_s0 + $0x1bc] sm:$0xf] }
  0x75   :  { %881 = vmatpush.bf16.xpose.msrb.mxu0 %v1119_v58  ;;  %894 = vmatpush.bf16.xpose.msrb.mxu1 %v1123_v59  ;;  %v1262_v58 = vld [vmem:[%s2488_s0 + $0x1a0] sm:$0xf] }
  0x76   :  { %907 = vmatpush.bf16.xpose.msrb.mxu2 %v1127_v60  ;;  %v1608_v59 = vld [vmem:[%s2488_s0 + $0x1dc] sm:$0xf0]  ;;  %v1600_v60 = vld [vmem:[%s2488_s0 + $0x1a4] sm:$0xf] }
  0x77   :  { %920 = vmatpush.bf16.xpose.msrb.mxu3 %v1131_v61  ;;  %v1264_v61 = vld [vmem:[%s2488_s0 + $0x1e0] sm:$0xf0]  ;;  %v1263_v2 = vor.u32 %v1608_v59, %v1262_v58  ;;  %v1650_v58 = vld [vmem:[%s2488_s0 + $0x334] sm:$0xf] }
  0x78   :  { %v1267_v3 = vor.u32 %v1600_v60, %v1264_v61  ;;  %v1472_v59 = vld [vmem:[%s2488_s0 + $0x370] sm:$0xf0]  ;;  %v1478_v60 = vld [vmem:[%s2488_s0 + $0x338] sm:$0xf] }
  0x79   :  { %v1659_v61 = vld [vmem:[%s2488_s0 + $0x374] sm:$0xf0] }
  0x7d   :  { %882 = vmatpush.bf16.xpose.msrb.mxu0 %v1055_v9  ;;  %895 = vmatpush.bf16.xpose.msrb.mxu1 %v1059_v13  ;;  %v1200_v9 = vld [vmem:[%s2488_s0 + $0x160] sm:$0xf0]  ;;  %v1208_v13 = vld [vmem:[%s2488_s0 + $0x168] sm:$0xf0] }
  0x7e   :  { %908 = vmatpush.bf16.xpose.msrb.mxu2 %v1063_v14  ;;  %v1199_v14 = vor.u32 %v1592_v7, %v1198_v6  ;;  %v1203_v15 = vor.u32 %v1584_v8, %v1200_v9  ;;  %v1406_v6 = vld [vmem:[%s2488_s0 + $0x2b0] sm:$0xf]  ;;  %v1634_v8 = vld [vmem:[%s2488_s0 + $0x2b4] sm:$0xf] }
  0x7f   :  { %921 = vmatpush.bf16.xpose.msrb.mxu3 %v1067_v17  ;;  %v1211_v17 = vor.u32 %v1585_v12, %v1208_v13  ;;  %v1642_v7 = vld [vmem:[%s2488_s0 + $0x2ec] sm:$0xf0]  ;;  %v1408_v9 = vld [vmem:[%s2488_s0 + $0x2f0] sm:$0xf0]  ;;  %v1635_v12 = vld [vmem:[%s2488_s0 + $0x2bc] sm:$0xf] }
  0x80   :  { %v1416_v13 = vld [vmem:[%s2488_s0 + $0x2f8] sm:$0xf0] }
  0x84   :  { %883 = vmatmul.bf16.vlgmr.msrb.gmra.mxu0 %v2040_v44  ;;  %896 = vmatmul.bf16.vlgmr.msrb.gmra.mxu1 %v2044_v46  ;;  %v1399_v44 = vor.u32 %v1641_v39, %v1398_v38  ;;  %v1326_v46 = vld [vmem:[%s2488_s0 + $0x220] sm:$0xf]  ;;  %v1534_v38 = vld [vmem:[%s2488_s0 + $0x3b0] sm:$0xf] }
  0x85   :  { %927 = vmatpush.bf16.xpose.msra.mxu0 %v1519_v18  ;;  %940 = vmatpush.bf16.xpose.msra.mxu1 %v1523_v19  ;;  %v1327_v54 = vor.u32 %v1624_v47, %v1326_v46  ;;  %v1134_v18 = vld [vmem:[%s2488_s0 + $0xa0] sm:$0xf]  ;;  %v1674_v39 = vld [vmem:[%s2488_s0 + $0x3ec] sm:$0xf0]  ;;  %v1667_v47 = vld [vmem:[%s2488_s0 + $0x3bc] sm:$0xf] }
  0x86   :  { %953 = vmatpush.bf16.xpose.msra.mxu2 %v1527_v20  ;;  %922 = vmatmul.bf16.vlgmr.msrb.gmra.mxu3 %v2042_v45  ;;  %v1403_v45 = vor.u32 %v1633_v40, %v1400_v41  ;;  %v1576_v19 = vld [vmem:[%s2488_s0 + $0xdc] sm:$0xf0]  ;;  %v1568_v20 = vld [vmem:[%s2488_s0 + $0xa4] sm:$0xf]  ;;  %v1666_v40 = vld [vmem:[%s2488_s0 + $0x3b4] sm:$0xf]  ;;  %v1535_v50 = vor.u32 %v1674_v39, %v1534_v38  ;;  %v1547_v53 = vor.u32 %v1667_v47, %v1544_v48 }
  0x87   :  { %966 = vmatpush.bf16.xpose.msra.mxu3 %v1531_v21  ;;  %909 = vmatmul.bf16.vlgmr.msrb.gmra.mxu2 %v2038_v42  ;;  %v1391_v42 = vor.u32 %v1640_v35, %v1390_v34  ;;  %v1136_v21 = vld [vmem:[%s2488_s0 + $0xe0] sm:$0xf0]  ;;  %v1135_v26 = vor.u32 %v1576_v19, %v1134_v18  ;;  %v1078_v34 = vld [vmem:[%s2488_s0 + $0x28] sm:$0xf]  ;;  %v1342_v18 = vld [vmem:[%s2488_s0 + $0x230] sm:$0xf] }
  0x88   :  { %v1139_v27 = vor.u32 %v1568_v20, %v1136_v21  ;;  %v1561_v35 = vld [vmem:[%s2488_s0 + $0x64] sm:$0xf0]  ;;  %v1626_v19 = vld [vmem:[%s2488_s0 + $0x26c] sm:$0xf0]  ;;  %v1618_v20 = vld [vmem:[%s2488_s0 + $0x234] sm:$0xf] }
  0x89   :  { %v1079_v46 = vor.u32 %v1561_v35, %v1078_v34  ;;  %v1344_v21 = vld [vmem:[%s2488_s0 + $0x270] sm:$0xf0]  ;;  %v1286_v34 = vld [vmem:[%s2488_s0 + $0x1b8] sm:$0xf]  ;;  %v1288_v38 = vld [vmem:[%s2488_s0 + $0x1f8] sm:$0xf0] }
  0x8a   :  { %v1611_v35 = vld [vmem:[%s2488_s0 + $0x1f4] sm:$0xf0]  ;;  %v1214_v47 = vld [vmem:[%s2488_s0 + $0x130] sm:$0xf] }
  0x8b   :  { %v1594_v48 = vld [vmem:[%s2488_s0 + $0x16c] sm:$0xf0] }
  0x8d   :  { %928 = vmatpush.bf16.xpose.msra.mxu0 %v1455_v30  ;;  %941 = vmatpush.bf16.xpose.msra.mxu1 %v1459_v31  ;;  %v1070_v30 = vld [vmem:[%s2488_s0 + $0x20] sm:$0xf] }
  0x8e   :  { %954 = vmatpush.bf16.xpose.msra.mxu2 %v1463_v32  ;;  %v1560_v31 = vld [vmem:[%s2488_s0 + $0x5c] sm:$0xf0]  ;;  %v1552_v32 = vld [vmem:[%s2488_s0 + $0x24] sm:$0xf] }
  0x8f   :  { %967 = vmatpush.bf16.xpose.msra.mxu3 %v1467_v33  ;;  %v1072_v33 = vld [vmem:[%s2488_s0 + $0x60] sm:$0xf0]  ;;  %v1071_v41 = vor.u32 %v1560_v31, %v1070_v30  ;;  %v1278_v30 = vld [vmem:[%s2488_s0 + $0x1b0] sm:$0xf] }
  0x90   :  { %v1610_v31 = vld [vmem:[%s2488_s0 + $0x1ec] sm:$0xf0] }
  0x91   :  { %v1279_v39 = vor.u32 %v1610_v31, %v1278_v30  ;;  %v166_v30 = vld [vmem:[#allocation1 + $0x3f] sm:$0xff] }
  0x95   :  { %929 = vmatpush.bf16.xpose.msra.mxu0 %v1391_v42  ;;  %942 = vmatpush.bf16.xpose.msra.mxu1 %v1395_v43  ;;  %v1536_v42 = vld [vmem:[%s2488_s0 + $0x3f0] sm:$0xf0]  ;;  %v1542_v43 = vld [vmem:[%s2488_s0 + $0x3b8] sm:$0xf] }
  0x96   :  { %955 = vmatpush.bf16.xpose.msra.mxu2 %v1399_v44  ;;  %v1675_v44 = vld [vmem:[%s2488_s0 + $0x3f4] sm:$0xf0]  ;;  %v1539_v51 = vor.u32 %v1666_v40, %v1536_v42  ;;  %v1287_v42 = vor.u32 %v1611_v35, %v1286_v34 }
  0x97   :  { %968 = vmatpush.bf16.xpose.msra.mxu3 %v1403_v45  ;;  %v1075_v45 = vor.u32 %v1552_v32, %v1072_v33  ;;  %v1543_v52 = vor.u32 %v1675_v44, %v1542_v43  ;;  %v1602_v32 = vld [vmem:[%s2488_s0 + $0x1b4] sm:$0xf] }
  0x98   :  { %v1280_v33 = vld [vmem:[%s2488_s0 + $0x1f0] sm:$0xf0] }
  0x9d   :  { %930 = vmatpush.bf16.xpose.msra.mxu0 %v1327_v54  ;;  %943 = vmatpush.bf16.xpose.msra.mxu1 %v1331_v55  ;;  %v159_v54 = vld [vmem:[#allocation1] sm:$0xff]  ;;  %v161_v55 = vld [vmem:[#allocation1 + $0x12] sm:$0xff] }
  0x9e   :  { %956 = vmatpush.bf16.xpose.msra.mxu2 %v1335_v56  ;;  %v1470_v56 = vld [vmem:[%s2488_s0 + $0x330] sm:$0xf] }
  0x9f   :  { %969 = vmatpush.bf16.xpose.msra.mxu3 %v1339_v57  ;;  %v1658_v57 = vld [vmem:[%s2488_s0 + $0x36c] sm:$0xf0] }
  0xa5   :  { %931 = vmatpush.bf16.xpose.msra.mxu0 %v1263_v2  ;;  %944 = vmatpush.bf16.xpose.msra.mxu1 %v1267_v3  ;;  %v1471_v2 = vor.u32 %v1658_v57, %v1470_v56  ;;  %v1475_v3 = vor.u32 %v1650_v58, %v1472_v59  ;;  %v1587_v56 = vld [vmem:[%s2488_s0 + $0x13c] sm:$0xf]  ;;  %v1215_v58 = vor.u32 %v1594_v48, %v1214_v47 }
  0xa6   :  { %957 = vmatpush.bf16.xpose.msra.mxu2 %v1271_v4  ;;  %v1479_v4 = vor.u32 %v1659_v61, %v1478_v60  ;;  %v1224_v57 = vld [vmem:[%s2488_s0 + $0x178] sm:$0xf0] }
  0xa7   :  { %970 = vmatpush.bf16.xpose.msra.mxu3 %v1275_v5  ;;  %v1483_v5 = vor.u32 %v1651_v63, %v1480_v0  ;;  %v1227_v0 = vor.u32 %v1587_v56, %v1224_v57 }
  0xad   :  { %932 = vmatpush.bf16.xpose.msra.mxu0 %v1199_v14  ;;  %945 = vmatpush.bf16.xpose.msra.mxu1 %v1203_v15  ;;  %v1407_v14 = vor.u32 %v1642_v7, %v1406_v6  ;;  %v1411_v15 = vor.u32 %v1634_v8, %v1408_v9  ;;  %v1158_v6 = vld [vmem:[%s2488_s0 + $0xb8] sm:$0xf]  ;;  %v1571_v9 = vld [vmem:[%s2488_s0 + $0xbc] sm:$0xf] }
  0xae   :  { %958 = vmatpush.bf16.xpose.msra.mxu2 %v1207_v16  ;;  %v1415_v16 = vor.u32 %v1643_v11, %v1414_v10  ;;  %v1579_v7 = vld [vmem:[%s2488_s0 + $0xf4] sm:$0xf0]  ;;  %v1160_v10 = vld [vmem:[%s2488_s0 + $0xf8] sm:$0xf0] }
  0xaf   :  { %971 = vmatpush.bf16.xpose.msra.mxu3 %v1211_v17  ;;  %v1419_v17 = vor.u32 %v1635_v12, %v1416_v13  ;;  %v1159_v13 = vor.u32 %v1579_v7, %v1158_v6 }
  0xb5   :  { %933 = vmatpush.bf16.xpose.msra.mxu0 %v1135_v26  ;;  %946 = vmatpush.bf16.xpose.msra.mxu1 %v1139_v27  ;;  %v1343_v26 = vor.u32 %v1626_v19, %v1342_v18  ;;  %v1347_v27 = vor.u32 %v1618_v20, %v1344_v21  ;;  %v1088_v18 = vld [vmem:[%s2488_s0 + $0x70] sm:$0xf0]  ;;  %v1094_v19 = vld [vmem:[%s2488_s0 + $0x38] sm:$0xf]  ;;  %v1555_v21 = vld [vmem:[%s2488_s0 + $0x3c] sm:$0xf] }
  0xb6   :  { %959 = vmatpush.bf16.xpose.msra.mxu2 %v1143_v28  ;;  %v1351_v28 = vor.u32 %v1627_v23, %v1350_v22  ;;  %v1563_v20 = vld [vmem:[%s2488_s0 + $0x74] sm:$0xf0]  ;;  %v1096_v22 = vld [vmem:[%s2488_s0 + $0x78] sm:$0xf0] }
  0xb7   :  { %972 = vmatpush.bf16.xpose.msra.mxu3 %v1147_v29  ;;  %v1355_v29 = vor.u32 %v1619_v24, %v1352_v25  ;;  %v1095_v25 = vor.u32 %v1563_v20, %v1094_v19 }
  0xbd   :  { %934 = vmatpush.bf16.xpose.msra.mxu0 %v1071_v41  ;;  %947 = vmatpush.bf16.xpose.msra.mxu1 %v1075_v45  ;;  %v1283_v41 = vor.u32 %v1602_v32, %v1280_v33  ;;  %v1291_v45 = vor.u32 %v1603_v37, %v1288_v38 }
  0xbe   :  { %960 = vmatpush.bf16.xpose.msra.mxu2 %v1079_v46 }
  0xbf   :  { %973 = vmatpush.bf16.xpose.msra.mxu3 %v1083_v49  ;;  %v1586_v49 = vld [vmem:[%s2488_s0 + $0x134] sm:$0xf] }
  0xc1   :  { %v832_v40 = vpop.f32.mrf.mxu0  ;;  %v845_v44 = vpop.f32.mrf.mxu1 }
  0xc2   :  { %v833_v43 = vadd.f32 %v832_v40, %v146_v36 }
  0xc4   :  { %935 = vmatmul.bf16.vlgmr.msra.gmra.mxu0 %v159_v54  ;;  %948 = vmatmul.bf16.vlgmr.msra.gmra.mxu1 %v160_v62  ;;  %v846_v46 = vadd.f32 %v845_v44, %v833_v43 }
  0xc5   :  { %979 = vmatpush.bf16.xpose.msrb.mxu0 %v1535_v50  ;;  %992 = vmatpush.bf16.xpose.msrb.mxu1 %v1539_v51  ;;  %v1216_v51 = vld [vmem:[%s2488_s0 + $0x170] sm:$0xf0] }
  0xc6   :  { %1005 = vmatpush.bf16.xpose.msrb.mxu2 %v1543_v52  ;;  %974 = vmatmul.bf16.vlgmr.msra.gmra.mxu3 %v162_v1  ;;  %v1222_v52 = vld [vmem:[%s2488_s0 + $0x138] sm:$0xf]  ;;  %v1219_v61 = vor.u32 %v1586_v49, %v1216_v51  ;;  %v1150_v1 = vld [vmem:[%s2488_s0 + $0xb0] sm:$0xf] }
  0xc7   :  { %1018 = vmatpush.bf16.xpose.msrb.mxu3 %v1547_v53  ;;  %961 = vmatmul.bf16.vlgmr.msra.gmra.mxu2 %v161_v55  ;;  %v1595_v53 = vld [vmem:[%s2488_s0 + $0x174] sm:$0xf0] }
  0xc8   :  { %v1223_v62 = vor.u32 %v1595_v53, %v1222_v52 }
  0xc9   :  { %v871_v55 = vpop.f32.mrf.mxu3  ;;  %v834_v60 = vpop.f32.mrf.mxu0 }
  0xca   :  { %v858_v50 = vpop.f32.mrf.mxu2  ;;  %v847_v63 = vpop.f32.mrf.mxu1 }
  0xcb   :  { %v859_v54 = vadd.f32 %v858_v50, %v846_v46 }
  0xcd   :  { %980 = vmatpush.bf16.xpose.msrb.mxu0 %v1471_v2  ;;  %993 = vmatpush.bf16.xpose.msrb.mxu1 %v1475_v3  ;;  %v872_v59 = vadd.f32 %v871_v55, %v859_v54  ;;  %v1578_v2 = vld [vmem:[%s2488_s0 + $0xec] sm:$0xf0]  ;;  %v1570_v3 = vld [vmem:[%s2488_s0 + $0xb4] sm:$0xf] }
  0xce   :  { %1006 = vmatpush.bf16.xpose.msrb.mxu2 %v1479_v4  ;;  %v1151_v11 = vor.u32 %v1578_v2, %v1150_v1 }
  0xcf   :  { %1019 = vmatpush.bf16.xpose.msrb.mxu3 %v1483_v5  ;;  %v1152_v5 = vld [vmem:[%s2488_s0 + $0xf0] sm:$0xf0] }
  0xd0   :  { %v1155_v12 = vor.u32 %v1570_v3, %v1152_v5 }
  0xd1   :  { %v873_v8 = vpop.f32.mrf.mxu3 }
  0xd2   :  { %v860_v4 = vpop.f32.mrf.mxu2 }
  0xd5   :  { %981 = vmatpush.bf16.xpose.msrb.mxu0 %v1407_v14  ;;  %994 = vmatpush.bf16.xpose.msrb.mxu1 %v1411_v15  ;;  %v1163_v14 = vor.u32 %v1571_v9, %v1160_v10  ;;  %v1086_v15 = vld [vmem:[%s2488_s0 + $0x30] sm:$0xf] }
  0xd6   :  { %1007 = vmatpush.bf16.xpose.msrb.mxu2 %v1415_v16  ;;  %v1562_v16 = vld [vmem:[%s2488_s0 + $0x6c] sm:$0xf0] }
  0xd7   :  { %1020 = vmatpush.bf16.xpose.msrb.mxu3 %v1419_v17  ;;  %v1554_v17 = vld [vmem:[%s2488_s0 + $0x34] sm:$0xf]  ;;  %v1087_v23 = vor.u32 %v1562_v16, %v1086_v15 }
  0xd8   :  { %v1091_v24 = vor.u32 %v1554_v17, %v1088_v18 }
  0xdd   :  { %982 = vmatpush.bf16.xpose.msrb.mxu0 %v1343_v26  ;;  %995 = vmatpush.bf16.xpose.msrb.mxu1 %v1347_v27  ;;  %v1099_v26 = vor.u32 %v1555_v21, %v1096_v22  ;;  %v163_v27 = vld [vmem:[#allocation1 + $0x24] sm:$0xff] }
  0xde   :  { %1008 = vmatpush.bf16.xpose.msrb.mxu2 %v1351_v28  ;;  %v164_v28 = vld [vmem:[#allocation1 + $0x2d] sm:$0xff] }
  0xdf   :  { %1021 = vmatpush.bf16.xpose.msrb.mxu3 %v1355_v29  ;;  %v165_v29 = vld [vmem:[#allocation1 + $0x36] sm:$0xff] }
  0xe5   :  { %983 = vmatpush.bf16.xpose.msrb.mxu0 %v1279_v39  ;;  %996 = vmatpush.bf16.xpose.msrb.mxu1 %v1283_v41 }
  0xe6   :  { %1009 = vmatpush.bf16.xpose.msrb.mxu2 %v1287_v42 }
  0xe7   :  { %1022 = vmatpush.bf16.xpose.msrb.mxu3 %v1291_v45 }
  0xed   :  { %984 = vmatpush.bf16.xpose.msrb.mxu0 %v1215_v58  ;;  %997 = vmatpush.bf16.xpose.msrb.mxu1 %v1219_v61 }
  0xee   :  { %1010 = vmatpush.bf16.xpose.msrb.mxu2 %v1223_v62 }
  0xef   :  { %1023 = vmatpush.bf16.xpose.msrb.mxu3 %v1227_v0 }
  0xf5   :  { %985 = vmatpush.bf16.xpose.msrb.mxu0 %v1151_v11  ;;  %998 = vmatpush.bf16.xpose.msrb.mxu1 %v1155_v12 }
  0xf6   :  { %1011 = vmatpush.bf16.xpose.msrb.mxu2 %v1159_v13 }
  0xf7   :  { %1024 = vmatpush.bf16.xpose.msrb.mxu3 %v1163_v14 }
  0xfd   :  { %986 = vmatpush.bf16.xpose.msrb.mxu0 %v1087_v23  ;;  %999 = vmatpush.bf16.xpose.msrb.mxu1 %v1091_v24 }
  0xfe   :  { %1012 = vmatpush.bf16.xpose.msrb.mxu2 %v1095_v25 }
  0xff   :  { %1025 = vmatpush.bf16.xpose.msrb.mxu3 %v1099_v26 }
 0x101   :  { %v884_v31 = vpop.f32.mrf.mxu0  ;;  %v897_v33 = vpop.f32.mrf.mxu1 }
 0x102   :  { %v885_v32 = vadd.f32 %v884_v31, %v872_v59 }
 0x104   :  { %987 = vmatmul.bf16.vlgmr.msrb.gmra.mxu0 %v163_v27  ;;  %1000 = vmatmul.bf16.vlgmr.msrb.gmra.mxu1 %v164_v28  ;;  %v898_v34 = vadd.f32 %v897_v33, %v885_v32 }
 0x105   :  { %1013 = vmatmul.bf16.vlgmr.msrb.gmra.mxu2 %v165_v29 }
 0x106   :  { %1026 = vmatmul.bf16.vlgmr.msrb.gmra.mxu3 %v166_v30 }
 0x109   :  { %v923_v37 = vpop.f32.mrf.mxu3  ;;  %v886_v38 = vpop.f32.mrf.mxu0 }
 0x10a   :  { %v910_v35 = vpop.f32.mrf.mxu2  ;;  %v899_v39 = vpop.f32.mrf.mxu1 }
 0x10b   :  { %v911_v36 = vadd.f32 %v910_v35, %v898_v34 }
 0x10d   :  { %v924_v40 = vadd.f32 %v923_v37, %v911_v36 }
 0x111   :  { %v925_v42 = vpop.f32.mrf.mxu3 }
 0x112   :  { %v912_v41 = vpop.f32.mrf.mxu2 }
 0x141   :  { %v936_v43 = vpop.f32.mrf.mxu0  ;;  %v949_v44 = vpop.f32.mrf.mxu1 }
 0x142   :  { %v937_v51 = vadd.f32 %v936_v43, %v924_v40 }
 0x144   :  { %v950_v52 = vadd.f32 %v949_v44, %v937_v51 }
 0x149   :  { %v975_v46 = vpop.f32.mrf.mxu3  ;;  %v938_v47 = vpop.f32.mrf.mxu0 }
 0x14a   :  { %v962_v45 = vpop.f32.mrf.mxu2  ;;  %v951_v48 = vpop.f32.mrf.mxu1 }
 0x14b   :  { %v963_v53 = vadd.f32 %v962_v45, %v950_v52 }
 0x14d   :  { %v976_v54 = vadd.f32 %v975_v46, %v963_v53 }
 0x151   :  { %v977_v50 = vpop.f32.mrf.mxu3 }
 0x152   :  { %v964_v49 = vpop.f32.mrf.mxu2 }
 0x181   :  { %v988_v55 = vpop.f32.mrf.mxu0  ;;  %v1001_v56 = vpop.f32.mrf.mxu1 }
 0x182   :  { %v989_v57 = vadd.f32 %v988_v55, %v976_v54 }
 0x184   :  { %v1002_v58 = vadd.f32 %v1001_v56, %v989_v57 }
 0x188   :  { %v1014_v59 = vpop.f32.mrf.mxu2 }
 0x189   :  { %v1015_v60 = vadd.f32 %v1014_v59, %v1002_v58  ;;  %v1027_v61 = vpop.f32.mrf.mxu3  ;;  %v990_v62 = vpop.f32.mrf.mxu0 }
 0x18a   :  { %v1003_v63 = vpop.f32.mrf.mxu1 }
 0x18b   :  { %v1028_v0 = vadd.f32 %v1027_v61, %v1015_v60 }
 0x18d   :  { %1031 = vst [vmem:[%s2491_s3] sm:$0x1] %v1028_v0 }
 0x190   :  { %v1016_v1 = vpop.f32.mrf.mxu2 }
 0x191   :  { %v1029_v2 = vpop.f32.mrf.mxu3 }

</bundles_post_ra>
